<compile_context>
chip_gen: v5e
topology: v5e:2x2
jax: 0.10.0
libtpu: 0.0.40
codegen_flags: <defaults>
</compile_context>

<pallas_src>
import jax
import jax.numpy as jnp
from jax.experimental import pallas as pl
from jax.experimental.pallas import tpu as pltpu


# ----------------------------- small helpers --------------------------------

def _round_up(x, m):
    return (x + m - 1) // m * m


def _silu(x):
    # x * sigmoid(x); approx reciprocal goes to the EUP slot next to exp.
    # (If num_blocks grows a lot, switch approx=False for tighter accuracy.)
    return x * pl.reciprocal(1.0 + jnp.exp(-x), approx=True)


_TAPS = [(oh, ow) for oh in (-1, 0, 1) for ow in (-1, 0, 1)]   # 3x3 tap order


# ------------------------------- kernel --------------------------------------

def _make_kernel(num_blocks, shortcut, H, W, NB, CINP, INTP, COUTP, Cout, offs):
    HW = H * W
    L = NB * HW

    def kernel(x_ref, slab_ref, mask_ref, out_ref):
        # Fold the batch onto the lane axis: (NB, CINP, HW) -> (CINP, NB*HW).
        # Concat boundaries are 128-aligned (HW multiple of 128) -> free.
        if NB == 1:
            x = x_ref[0]
        else:
            x = jnp.concatenate([x_ref[n] for n in range(NB)], axis=-1)

        # Static, 8-aligned slices into the packed parameter slab.
        def w(name, rows, cols):
            o = offs[name]
            return slab_ref[o:o + rows, :cols]

        def b(name, rows):
            o = offs[name]
            return slab_ref[o:o + rows, 0:1]

        # Load the 8 shifted-tap validity masks once (2 vregs at L=256).
        m_all = mask_ref[...]                                    # (8, L)

        # conv_layer_1 / conv_layer_2: two separate 1x1 convs (+BN+SiLU), both
        # results start at sublane 0 (no packed-x12 offset-4 split).
        x1 = _silu(jnp.dot(w("w1", INTP, CINP), x,
                           preferred_element_type=jnp.float32) + b("b1", INTP))
        x2 = _silu(jnp.dot(w("w2", INTP, CINP), x,
                           preferred_element_type=jnp.float32) + b("b2", INTP))

        # YoloBottleneck stack (kernel_size=[1,3], expand_ratio=1.0).
        for i in range(num_blocks):
            h = _silu(jnp.dot(w(f"wb1_{i}", INTP, INTP), x2,
                              preferred_element_type=jnp.float32)
                      + b(f"bb1_{i}", INTP))

            # 3x3 "same" conv: 9 per-tap matmuls accumulated in f32 (no im2col
            # concat, no misaligned sublane placement).  Lane rolls never leak
            # across image boundaries because leaked positions are exactly the
            # edge-invalid positions zeroed by the mask.
            acc = jnp.zeros((INTP, L), jnp.float32)
            wb2_off = offs[f"wb2_{i}"]
            mrow = 0
            for t, (oh, ow) in enumerate(_TAPS):
                off = oh * W + ow
                if off == 0:
                    shifted = h
                else:
                    shifted = pltpu.roll(h, shift=(-off) % L, axis=1)
                    shifted = shifted * m_all[mrow:mrow + 1, :]
                    mrow += 1
                wt = slab_ref[wb2_off + t * INTP: wb2_off + (t + 1) * INTP, :INTP]
                acc = acc + jnp.dot(wt, shifted,
                                    preferred_element_type=jnp.float32)
            h = _silu(acc + b(f"bb2_{i}", INTP))
            x2 = x2 + h if shortcut else h

        # conv_layer_3 on the channel concat, without materializing the concat.
        y = _silu(jnp.dot(w("w3a", COUTP, INTP), x1,
                          preferred_element_type=jnp.float32)
                  + jnp.dot(w("w3b", COUTP, INTP), x2,
                            preferred_element_type=jnp.float32)
                  + b("b3", COUTP))

        # Un-fold the batch: lane slices at 128-aligned offsets, unmasked stores.
        for n in range(NB):
            out_ref[n] = y[:Cout, n * HW:(n + 1) * HW].astype(out_ref.dtype)

    return kernel


# --------------------------- parameter packing --------------------------------

def _pack_params(params, num_blocks, inter, Cin, Cout, INTP, CINP, COUTP, KW):
    """Pack all (BN-folded) weights/biases into one (R, KW) f32 slab.

    Every logical array occupies an 8-aligned row range; weights are stored
    transposed as (out, in) and padded to full sublane tiles, biases live in
    column 0 of their rows.
    """
    blocks, offs = [], {}

    def add(name, mat):
        offs[name] = sum(bk.shape[0] for bk in blocks)
        r, c = mat.shape
        blocks.append(jnp.pad(mat, ((0, 0), (0, KW - c))).astype(jnp.float32))

    def pad2(m, r, c):
        return jnp.pad(m, ((0, r - m.shape[0]), (0, c - m.shape[1])))

    def col(v, r):
        return jnp.pad(v[:, None], ((0, r - v.shape[0]), (0, 0)))

    add("w1", pad2(params["w1"].T, INTP, CINP))
    add("b1", col(params["b1"], INTP))
    add("w2", pad2(params["w2"].T, INTP, CINP))
    add("b2", col(params["b2"], INTP))
    for i in range(num_blocks):
        add(f"wb1_{i}", pad2(params[f"wb1_{i}"].T, INTP, INTP))
        add(f"bb1_{i}", col(params[f"bb1_{i}"], INTP))
        w3x3 = params[f"wb2_{i}"]                         # (3, 3, in, out) HWIO
        taps = jnp.concatenate(
            [pad2(w3x3[kh, kw].T, INTP, INTP)
             for kh in range(3) for kw in range(3)], axis=0)
        add(f"wb2_{i}", taps)                             # (9*INTP, INTP)
        add(f"bb2_{i}", col(params[f"bb2_{i}"], INTP))
    w3 = params["w3"]                                     # (2*inter, Cout)
    add("w3a", pad2(w3[:inter].T, COUTP, INTP))
    add("w3b", pad2(w3[inter:].T, COUTP, INTP))
    add("b3", col(params["b3"], COUTP))

    slab = jnp.concatenate(blocks, axis=0)
    pad_rows = _round_up(slab.shape[0], 8) - slab.shape[0]
    if pad_rows:
        slab = jnp.pad(slab, ((0, pad_rows), (0, 0)))
    return slab, offs


def _make_tap_masks(H, W, NB):
    """(8, NB*H*W) f32: per-position validity of each shifted 3x3 tap."""
    HW = H * W
    idx = jnp.arange(HW)
    hh, ww = idx // W, idx % W
    rows = []
    for (oh, ow) in _TAPS:
        if oh == 0 and ow == 0:
            continue
        m = ((hh + oh >= 0) & (hh + oh < H) &
             (ww + ow >= 0) & (ww + ow < W)).astype(jnp.float32)
        rows.append(m)
    mask = jnp.stack(rows, axis=0)                        # (8, HW)
    return jnp.tile(mask, (1, NB))                        # (8, NB*HW)


# ------------------------------- wrapper --------------------------------------

def csp_block_pallas(x_nchw, params, num_blocks, shortcut, batch_block=None):
    """x_nchw: (N, Cin, H, W) float32 (PyTorch layout). Returns (N, Cout, H, W)."""
    N, Cin, H, W = x_nchw.shape
    HW = H * W
    inter = params["w1"].shape[1]
    Cout = params["w3"].shape[1]

    INTP = _round_up(inter, 8)
    CINP = _round_up(Cin, 8)
    COUTP = _round_up(Cout, 8)
    KW = max(CINP, INTP)

    # Default: >=2 grid steps so both v7x TensorCores get work; on single-TC
    # chips the extra ~0.35us/step is negligible at these sizes.
    NB = pl.cdiv(N, 2) if batch_block is None else max(1, min(batch_block, N))

    slab, offs = _pack_params(params, num_blocks, inter, Cin, Cout,
                              INTP, CINP, COUTP, KW)
    masks = _make_tap_masks(H, W, NB)

    x = x_nchw.reshape(N, Cin, HW)        # free: NCHW is already (N, C, H*W)
    if CINP != Cin:
        x = jnp.pad(x, ((0, 0), (0, CINP - Cin), (0, 0)))

    kernel = _make_kernel(num_blocks, shortcut, H, W, NB,
                          CINP, INTP, COUTP, Cout, offs)

    out = pl.pallas_call(
        kernel,
        out_shape=jax.ShapeDtypeStruct((N, Cout, HW), jnp.float32),
        grid=(pl.cdiv(N, NB),),
        in_specs=[
            pl.BlockSpec((NB, CINP, HW), lambda b: (b, 0, 0)),
            pl.BlockSpec(slab.shape, lambda b: (0, 0)),
            pl.BlockSpec(masks.shape, lambda b: (0, 0)),
        ],
        out_specs=pl.BlockSpec((NB, Cout, HW), lambda b: (b, 0, 0)),
        compiler_params=pltpu.CompilerParams(dimension_semantics=("parallel",)),
    )(x, slab, masks)
    return out.reshape(N, Cout, H, W)     # free reshape back to NCHW


# ----------------------- deterministic parameter init ----------------------

def _bn_fold(key, c, eps=1e-5):
    kg, kb, km, kv = jax.random.split(key, 4)
    gamma = 1.0 + 0.1 * jax.random.normal(kg, (c,), jnp.float32)
    beta = 0.1 * jax.random.normal(kb, (c,), jnp.float32)
    mean = 0.1 * jax.random.normal(km, (c,), jnp.float32)
    var = jax.random.uniform(kv, (c,), jnp.float32, 0.5, 1.5)
    scale = gamma / jnp.sqrt(var + eps)
    return scale, beta - mean * scale


def init_params(key, in_dim, out_dim, num_blocks, expand_ratio=0.5):
    inter = round(out_dim * expand_ratio)

    def conv1x1_p(k, ci, co):
        kw, kb = jax.random.split(k)
        w = 0.1 * jax.random.normal(kw, (ci, co), jnp.float32)
        scale, bias = _bn_fold(kb, co)
        return w * scale[None, :], bias

    def conv3x3_p(k, ci, co):
        kw, kb = jax.random.split(k)
        w = 0.1 * jax.random.normal(kw, (3, 3, ci, co), jnp.float32)   # HWIO
        scale, bias = _bn_fold(kb, co)
        return w * scale[None, None, None, :], bias

    keys = jax.random.split(key, 3 + 2 * num_blocks)
    params = {}
    params["w1"], params["b1"] = conv1x1_p(keys[0], in_dim, inter)
    params["w2"], params["b2"] = conv1x1_p(keys[1], in_dim, inter)
    for i in range(num_blocks):
        params[f"wb1_{i}"], params[f"bb1_{i}"] = conv1x1_p(keys[2 + 2 * i], inter, inter)
        params[f"wb2_{i}"], params[f"bb2_{i}"] = conv3x3_p(keys[3 + 2 * i], inter, inter)
    params["w3"], params["b3"] = conv1x1_p(keys[2 + 2 * num_blocks], 2 * inter, out_dim)
    return params


# --------------------------- pure-JAX reference -----------------------------

def csp_block_ref(x_nchw, params, num_blocks, shortcut):
    x = jnp.transpose(x_nchw, (0, 2, 3, 1))
    silu = lambda v: v * jax.nn.sigmoid(v)

    def c1(t, w, b):
        return jnp.einsum('nhwc,cd->nhwd', t, w) + b.reshape(1, 1, 1, -1)

    def c3(t, w, b):
        y = jax.lax.conv_general_dilated(
            t, w, (1, 1), 'SAME', dimension_numbers=('NHWC', 'HWIO', 'NHWC'))
        return y + b.reshape(1, 1, 1, -1)

    x1 = silu(c1(x, params["w1"], params["b1"]))
    x2 = silu(c1(x, params["w2"], params["b2"]))
    for i in range(num_blocks):
        h = silu(c1(x2, params[f"wb1_{i}"], params[f"bb1_{i}"]))
        h = silu(c3(h, params[f"wb2_{i}"], params[f"bb2_{i}"]))
        x2 = x2 + h if shortcut else h
    out = silu(c1(jnp.concatenate([x1, x2], axis=-1), params["w3"], params["b3"]))
    return jnp.transpose(out, (0, 3, 1, 2))


# --------------------------------- main -------------------------------------

if __name__ == "__main__":
    key = jax.random.PRNGKey(0)
    N, Cin, H, W = 2, 8, 16, 16
    out_dim = 8
    num_blocks = 2
    shortcut = True            # exercises the residual path in YoloBottleneck

    kx, kp = jax.random.split(key)
    x = jax.random.normal(kx, (N, Cin, H, W), jnp.float32)
    params = init_params(kp, Cin, out_dim, num_blocks)

    out = csp_block_pallas(x, params, num_blocks, shortcut)
    out = jax.block_until_ready(out)

    ref = csp_block_ref(x, params, num_blocks, shortcut)
    assert out.shape == (N, out_dim, H, W)
    err = float(jnp.max(jnp.abs(out - ref)))
    assert jnp.allclose(out, ref, atol=5e-3, rtol=5e-3), f"max abs err {err}"

    print("KERNEL_OK")
</pallas_src>

<mosaic_0001>
module attributes {stable_mosaic.version = 11 : i64} {
  func.func @kernel(%arg0: i32, %arg1: memref<1x8x256xf32, #tpu.memory_space<vmem>>, %arg2: memref<248x8xf32, #tpu.memory_space<vmem>>, %arg3: memref<8x256xf32, #tpu.memory_space<vmem>>, %arg4: memref<1x8x256xf32, #tpu.memory_space<vmem>>) attributes {dimension_semantics = [#tpu.dimension_semantics<parallel>], iteration_bounds = array<i64: 2>, scalar_prefetch = 0 : i64, scratch_operands = 0 : i64, tpu.core_type = #tpu.core_type<tc>, window_params = [{transform_indices = @transform_0, window_bounds = array<i64: 1, 8, 256>}, {pipeline_mode = #tpu.pipeline_mode<synchronous>, transform_indices = @transform_1, window_bounds = array<i64: 248, 8>}, {pipeline_mode = #tpu.pipeline_mode<synchronous>, transform_indices = @transform_2, window_bounds = array<i64: 8, 256>}, {transform_indices = @transform_3, window_bounds = array<i64: 1, 8, 256>}]} {
    %c0 = arith.constant 0 : index
    %c0_0 = arith.constant 0 : index
    %c0_1 = arith.constant 0 : index
    %0 = vector.load %arg1[%c0, %c0_0, %c0_1] : memref<1x8x256xf32, #tpu.memory_space<vmem>>, vector<1x8x256xf32>
    %1 = vector.shape_cast %0 : vector<1x8x256xf32> to vector<8x256xf32>
    %c0_2 = arith.constant 0 : index
    %c0_3 = arith.constant 0 : index
    %2 = vector.load %arg3[%c0_2, %c0_3] : memref<8x256xf32, #tpu.memory_space<vmem>>, vector<8x256xf32>
    %c0_4 = arith.constant 0 : index
    %c0_5 = arith.constant 0 : index
    %3 = vector.load %arg2[%c0_4, %c0_5] : memref<248x8xf32, #tpu.memory_space<vmem>>, vector<8x8xf32>
    %cst = arith.constant dense<0.000000e+00> : vector<8x256xf32>
    %4 = tpu.matmul %3, %1, %cst {dimension_numbers = #tpu.dot_dimension_numbers<[1], [0], [0], [1], [0, 0, 1, 1], [], []>} : vector<8x8xf32>, vector<8x256xf32>, vector<8x256xf32> -> vector<8x256xf32>
    %c8 = arith.constant 8 : index
    %c0_6 = arith.constant 0 : index
    %5 = vector.load %arg2[%c8, %c0_6] : memref<248x8xf32, #tpu.memory_space<vmem>>, vector<8x1xf32>
    %6 = vector.broadcast %5 : vector<8x1xf32> to vector<8x256xf32>
    %7 = arith.addf %4, %6 : vector<8x256xf32>
    %cst_7 = arith.constant 0.000000e+00 : f32
    %8 = vector.broadcast %cst_7 : f32 to vector<8x256xf32>
    %9 = arith.subf %8, %7 : vector<8x256xf32>
    %10 = math.exp %9 : vector<8x256xf32>
    %cst_8 = arith.constant 1.000000e+00 : f32
    %11 = vector.broadcast %cst_8 : f32 to vector<8x256xf32>
    %12 = arith.addf %11, %10 : vector<8x256xf32>
    %13 = tpu.reciprocal %12 {approx = true} : vector<8x256xf32> -> vector<8x256xf32>
    %14 = arith.mulf %7, %13 : vector<8x256xf32>
    %c16 = arith.constant 16 : index
    %c0_9 = arith.constant 0 : index
    %15 = vector.load %arg2[%c16, %c0_9] : memref<248x8xf32, #tpu.memory_space<vmem>>, vector<8x8xf32>
    %cst_10 = arith.constant dense<0.000000e+00> : vector<8x256xf32>
    %16 = tpu.matmul %15, %1, %cst_10 {dimension_numbers = #tpu.dot_dimension_numbers<[1], [0], [0], [1], [0, 0, 1, 1], [], []>} : vector<8x8xf32>, vector<8x256xf32>, vector<8x256xf32> -> vector<8x256xf32>
    %c24 = arith.constant 24 : index
    %c0_11 = arith.constant 0 : index
    %17 = vector.load %arg2[%c24, %c0_11] : memref<248x8xf32, #tpu.memory_space<vmem>>, vector<8x1xf32>
    %18 = vector.broadcast %17 : vector<8x1xf32> to vector<8x256xf32>
    %19 = arith.addf %16, %18 : vector<8x256xf32>
    %cst_12 = arith.constant 0.000000e+00 : f32
    %20 = vector.broadcast %cst_12 : f32 to vector<8x256xf32>
    %21 = arith.subf %20, %19 : vector<8x256xf32>
    %22 = math.exp %21 : vector<8x256xf32>
    %cst_13 = arith.constant 1.000000e+00 : f32
    %23 = vector.broadcast %cst_13 : f32 to vector<8x256xf32>
    %24 = arith.addf %23, %22 : vector<8x256xf32>
    %25 = tpu.reciprocal %24 {approx = true} : vector<8x256xf32> -> vector<8x256xf32>
    %26 = arith.mulf %19, %25 : vector<8x256xf32>
    %c32 = arith.constant 32 : index
    %c0_14 = arith.constant 0 : index
    %27 = vector.load %arg2[%c32, %c0_14] : memref<248x8xf32, #tpu.memory_space<vmem>>, vector<8x8xf32>
    %cst_15 = arith.constant dense<0.000000e+00> : vector<8x256xf32>
    %28 = tpu.matmul %27, %26, %cst_15 {dimension_numbers = #tpu.dot_dimension_numbers<[1], [0], [0], [1], [0, 0, 1, 1], [], []>} : vector<8x8xf32>, vector<8x256xf32>, vector<8x256xf32> -> vector<8x256xf32>
    %c40 = arith.constant 40 : index
    %c0_16 = arith.constant 0 : index
    %29 = vector.load %arg2[%c40, %c0_16] : memref<248x8xf32, #tpu.memory_space<vmem>>, vector<8x1xf32>
    %30 = vector.broadcast %29 : vector<8x1xf32> to vector<8x256xf32>
    %31 = arith.addf %28, %30 : vector<8x256xf32>
    %cst_17 = arith.constant 0.000000e+00 : f32
    %32 = vector.broadcast %cst_17 : f32 to vector<8x256xf32>
    %33 = arith.subf %32, %31 : vector<8x256xf32>
    %34 = math.exp %33 : vector<8x256xf32>
    %cst_18 = arith.constant 1.000000e+00 : f32
    %35 = vector.broadcast %cst_18 : f32 to vector<8x256xf32>
    %36 = arith.addf %35, %34 : vector<8x256xf32>
    %37 = tpu.reciprocal %36 {approx = true} : vector<8x256xf32> -> vector<8x256xf32>
    %38 = arith.mulf %31, %37 : vector<8x256xf32>
    %cst_19 = arith.constant 0.000000e+00 : f32
    %39 = vector.broadcast %cst_19 : f32 to vector<8x256xf32>
    %c17_i32 = arith.constant 17 : i32
    %40 = tpu.dynamic_rotate %38 by %c17_i32 dim 1 : vector<8x256xf32>, i32 -> vector<8x256xf32>
    %41 = vector.extract_strided_slice %2 {offsets = [0, 0], sizes = [1, 256], strides = [1, 1]} : vector<8x256xf32> to vector<1x256xf32>
    %42 = vector.broadcast %41 : vector<1x256xf32> to vector<8x256xf32>
    %43 = arith.mulf %40, %42 : vector<8x256xf32>
    %c48 = arith.constant 48 : index
    %c0_20 = arith.constant 0 : index
    %44 = vector.load %arg2[%c48, %c0_20] : memref<248x8xf32, #tpu.memory_space<vmem>>, vector<8x8xf32>
    %cst_21 = arith.constant dense<0.000000e+00> : vector<8x256xf32>
    %45 = tpu.matmul %44, %43, %cst_21 {dimension_numbers = #tpu.dot_dimension_numbers<[1], [0], [0], [1], [0, 0, 1, 1], [], []>} : vector<8x8xf32>, vector<8x256xf32>, vector<8x256xf32> -> vector<8x256xf32>
    %46 = arith.addf %39, %45 : vector<8x256xf32>
    %c16_i32 = arith.constant 16 : i32
    %47 = tpu.dynamic_rotate %38 by %c16_i32 dim 1 : vector<8x256xf32>, i32 -> vector<8x256xf32>
    %48 = vector.extract_strided_slice %2 {offsets = [1, 0], sizes = [1, 256], strides = [1, 1]} : vector<8x256xf32> to vector<1x256xf32>
    %49 = vector.broadcast %48 : vector<1x256xf32> to vector<8x256xf32>
    %50 = arith.mulf %47, %49 : vector<8x256xf32>
    %c56 = arith.constant 56 : index
    %c0_22 = arith.constant 0 : index
    %51 = vector.load %arg2[%c56, %c0_22] : memref<248x8xf32, #tpu.memory_space<vmem>>, vector<8x8xf32>
    %cst_23 = arith.constant dense<0.000000e+00> : vector<8x256xf32>
    %52 = tpu.matmul %51, %50, %cst_23 {dimension_numbers = #tpu.dot_dimension_numbers<[1], [0], [0], [1], [0, 0, 1, 1], [], []>} : vector<8x8xf32>, vector<8x256xf32>, vector<8x256xf32> -> vector<8x256xf32>
    %53 = arith.addf %46, %52 : vector<8x256xf32>
    %c15_i32 = arith.constant 15 : i32
    %54 = tpu.dynamic_rotate %38 by %c15_i32 dim 1 : vector<8x256xf32>, i32 -> vector<8x256xf32>
    %55 = vector.extract_strided_slice %2 {offsets = [2, 0], sizes = [1, 256], strides = [1, 1]} : vector<8x256xf32> to vector<1x256xf32>
    %56 = vector.broadcast %55 : vector<1x256xf32> to vector<8x256xf32>
    %57 = arith.mulf %54, %56 : vector<8x256xf32>
    %c64 = arith.constant 64 : index
    %c0_24 = arith.constant 0 : index
    %58 = vector.load %arg2[%c64, %c0_24] : memref<248x8xf32, #tpu.memory_space<vmem>>, vector<8x8xf32>
    %cst_25 = arith.constant dense<0.000000e+00> : vector<8x256xf32>
    %59 = tpu.matmul %58, %57, %cst_25 {dimension_numbers = #tpu.dot_dimension_numbers<[1], [0], [0], [1], [0, 0, 1, 1], [], []>} : vector<8x8xf32>, vector<8x256xf32>, vector<8x256xf32> -> vector<8x256xf32>
    %60 = arith.addf %53, %59 : vector<8x256xf32>
    %c1_i32 = arith.constant 1 : i32
    %61 = tpu.dynamic_rotate %38 by %c1_i32 dim 1 : vector<8x256xf32>, i32 -> vector<8x256xf32>
    %62 = vector.extract_strided_slice %2 {offsets = [3, 0], sizes = [1, 256], strides = [1, 1]} : vector<8x256xf32> to vector<1x256xf32>
    %63 = vector.broadcast %62 : vector<1x256xf32> to vector<8x256xf32>
    %64 = arith.mulf %61, %63 : vector<8x256xf32>
    %c72 = arith.constant 72 : index
    %c0_26 = arith.constant 0 : index
    %65 = vector.load %arg2[%c72, %c0_26] : memref<248x8xf32, #tpu.memory_space<vmem>>, vector<8x8xf32>
    %cst_27 = arith.constant dense<0.000000e+00> : vector<8x256xf32>
    %66 = tpu.matmul %65, %64, %cst_27 {dimension_numbers = #tpu.dot_dimension_numbers<[1], [0], [0], [1], [0, 0, 1, 1], [], []>} : vector<8x8xf32>, vector<8x256xf32>, vector<8x256xf32> -> vector<8x256xf32>
    %67 = arith.addf %60, %66 : vector<8x256xf32>
    %c80 = arith.constant 80 : index
    %c0_28 = arith.constant 0 : index
    %68 = vector.load %arg2[%c80, %c0_28] : memref<248x8xf32, #tpu.memory_space<vmem>>, vector<8x8xf32>
    %cst_29 = arith.constant dense<0.000000e+00> : vector<8x256xf32>
    %69 = tpu.matmul %68, %38, %cst_29 {dimension_numbers = #tpu.dot_dimension_numbers<[1], [0], [0], [1], [0, 0, 1, 1], [], []>} : vector<8x8xf32>, vector<8x256xf32>, vector<8x256xf32> -> vector<8x256xf32>
    %70 = arith.addf %67, %69 : vector<8x256xf32>
    %c255_i32 = arith.constant 255 : i32
    %71 = tpu.dynamic_rotate %38 by %c255_i32 dim 1 : vector<8x256xf32>, i32 -> vector<8x256xf32>
    %72 = vector.extract_strided_slice %2 {offsets = [4, 0], sizes = [1, 256], strides = [1, 1]} : vector<8x256xf32> to vector<1x256xf32>
    %73 = vector.broadcast %72 : vector<1x256xf32> to vector<8x256xf32>
    %74 = arith.mulf %71, %73 : vector<8x256xf32>
    %c88 = arith.constant 88 : index
    %c0_30 = arith.constant 0 : index
    %75 = vector.load %arg2[%c88, %c0_30] : memref<248x8xf32, #tpu.memory_space<vmem>>, vector<8x8xf32>
    %cst_31 = arith.constant dense<0.000000e+00> : vector<8x256xf32>
    %76 = tpu.matmul %75, %74, %cst_31 {dimension_numbers = #tpu.dot_dimension_numbers<[1], [0], [0], [1], [0, 0, 1, 1], [], []>} : vector<8x8xf32>, vector<8x256xf32>, vector<8x256xf32> -> vector<8x256xf32>
    %77 = arith.addf %70, %76 : vector<8x256xf32>
    %c241_i32 = arith.constant 241 : i32
    %78 = tpu.dynamic_rotate %38 by %c241_i32 dim 1 : vector<8x256xf32>, i32 -> vector<8x256xf32>
    %79 = vector.extract_strided_slice %2 {offsets = [5, 0], sizes = [1, 256], strides = [1, 1]} : vector<8x256xf32> to vector<1x256xf32>
    %80 = vector.broadcast %79 : vector<1x256xf32> to vector<8x256xf32>
    %81 = arith.mulf %78, %80 : vector<8x256xf32>
    %c96 = arith.constant 96 : index
    %c0_32 = arith.constant 0 : index
    %82 = vector.load %arg2[%c96, %c0_32] : memref<248x8xf32, #tpu.memory_space<vmem>>, vector<8x8xf32>
    %cst_33 = arith.constant dense<0.000000e+00> : vector<8x256xf32>
    %83 = tpu.matmul %82, %81, %cst_33 {dimension_numbers = #tpu.dot_dimension_numbers<[1], [0], [0], [1], [0, 0, 1, 1], [], []>} : vector<8x8xf32>, vector<8x256xf32>, vector<8x256xf32> -> vector<8x256xf32>
    %84 = arith.addf %77, %83 : vector<8x256xf32>
    %c240_i32 = arith.constant 240 : i32
    %85 = tpu.dynamic_rotate %38 by %c240_i32 dim 1 : vector<8x256xf32>, i32 -> vector<8x256xf32>
    %86 = vector.extract_strided_slice %2 {offsets = [6, 0], sizes = [1, 256], strides = [1, 1]} : vector<8x256xf32> to vector<1x256xf32>
    %87 = vector.broadcast %86 : vector<1x256xf32> to vector<8x256xf32>
    %88 = arith.mulf %85, %87 : vector<8x256xf32>
    %c104 = arith.constant 104 : index
    %c0_34 = arith.constant 0 : index
    %89 = vector.load %arg2[%c104, %c0_34] : memref<248x8xf32, #tpu.memory_space<vmem>>, vector<8x8xf32>
    %cst_35 = arith.constant dense<0.000000e+00> : vector<8x256xf32>
    %90 = tpu.matmul %89, %88, %cst_35 {dimension_numbers = #tpu.dot_dimension_numbers<[1], [0], [0], [1], [0, 0, 1, 1], [], []>} : vector<8x8xf32>, vector<8x256xf32>, vector<8x256xf32> -> vector<8x256xf32>
    %91 = arith.addf %84, %90 : vector<8x256xf32>
    %c239_i32 = arith.constant 239 : i32
    %92 = tpu.dynamic_rotate %38 by %c239_i32 dim 1 : vector<8x256xf32>, i32 -> vector<8x256xf32>
    %93 = vector.extract_strided_slice %2 {offsets = [7, 0], sizes = [1, 256], strides = [1, 1]} : vector<8x256xf32> to vector<1x256xf32>
    %94 = vector.broadcast %93 : vector<1x256xf32> to vector<8x256xf32>
    %95 = arith.mulf %92, %94 : vector<8x256xf32>
    %c112 = arith.constant 112 : index
    %c0_36 = arith.constant 0 : index
    %96 = vector.load %arg2[%c112, %c0_36] : memref<248x8xf32, #tpu.memory_space<vmem>>, vector<8x8xf32>
    %cst_37 = arith.constant dense<0.000000e+00> : vector<8x256xf32>
    %97 = tpu.matmul %96, %95, %cst_37 {dimension_numbers = #tpu.dot_dimension_numbers<[1], [0], [0], [1], [0, 0, 1, 1], [], []>} : vector<8x8xf32>, vector<8x256xf32>, vector<8x256xf32> -> vector<8x256xf32>
    %98 = arith.addf %91, %97 : vector<8x256xf32>
    %c120 = arith.constant 120 : index
    %c0_38 = arith.constant 0 : index
    %99 = vector.load %arg2[%c120, %c0_38] : memref<248x8xf32, #tpu.memory_space<vmem>>, vector<8x1xf32>
    %100 = vector.broadcast %99 : vector<8x1xf32> to vector<8x256xf32>
    %101 = arith.addf %98, %100 : vector<8x256xf32>
    %cst_39 = arith.constant 0.000000e+00 : f32
    %102 = vector.broadcast %cst_39 : f32 to vector<8x256xf32>
    %103 = arith.subf %102, %101 : vector<8x256xf32>
    %104 = math.exp %103 : vector<8x256xf32>
    %cst_40 = arith.constant 1.000000e+00 : f32
    %105 = vector.broadcast %cst_40 : f32 to vector<8x256xf32>
    %106 = arith.addf %105, %104 : vector<8x256xf32>
    %107 = tpu.reciprocal %106 {approx = true} : vector<8x256xf32> -> vector<8x256xf32>
    %108 = arith.mulf %101, %107 : vector<8x256xf32>
    %109 = arith.addf %26, %108 : vector<8x256xf32>
    %c128 = arith.constant 128 : index
    %c0_41 = arith.constant 0 : index
    %110 = vector.load %arg2[%c128, %c0_41] : memref<248x8xf32, #tpu.memory_space<vmem>>, vector<8x8xf32>
    %cst_42 = arith.constant dense<0.000000e+00> : vector<8x256xf32>
    %111 = tpu.matmul %110, %109, %cst_42 {dimension_numbers = #tpu.dot_dimension_numbers<[1], [0], [0], [1], [0, 0, 1, 1], [], []>} : vector<8x8xf32>, vector<8x256xf32>, vector<8x256xf32> -> vector<8x256xf32>
    %c136 = arith.constant 136 : index
    %c0_43 = arith.constant 0 : index
    %112 = vector.load %arg2[%c136, %c0_43] : memref<248x8xf32, #tpu.memory_space<vmem>>, vector<8x1xf32>
    %113 = vector.broadcast %112 : vector<8x1xf32> to vector<8x256xf32>
    %114 = arith.addf %111, %113 : vector<8x256xf32>
    %cst_44 = arith.constant 0.000000e+00 : f32
    %115 = vector.broadcast %cst_44 : f32 to vector<8x256xf32>
    %116 = arith.subf %115, %114 : vector<8x256xf32>
    %117 = math.exp %116 : vector<8x256xf32>
    %cst_45 = arith.constant 1.000000e+00 : f32
    %118 = vector.broadcast %cst_45 : f32 to vector<8x256xf32>
    %119 = arith.addf %118, %117 : vector<8x256xf32>
    %120 = tpu.reciprocal %119 {approx = true} : vector<8x256xf32> -> vector<8x256xf32>
    %121 = arith.mulf %114, %120 : vector<8x256xf32>
    %cst_46 = arith.constant 0.000000e+00 : f32
    %122 = vector.broadcast %cst_46 : f32 to vector<8x256xf32>
    %c17_i32_47 = arith.constant 17 : i32
    %123 = tpu.dynamic_rotate %121 by %c17_i32_47 dim 1 : vector<8x256xf32>, i32 -> vector<8x256xf32>
    %124 = vector.extract_strided_slice %2 {offsets = [0, 0], sizes = [1, 256], strides = [1, 1]} : vector<8x256xf32> to vector<1x256xf32>
    %125 = vector.broadcast %124 : vector<1x256xf32> to vector<8x256xf32>
    %126 = arith.mulf %123, %125 : vector<8x256xf32>
    %c144 = arith.constant 144 : index
    %c0_48 = arith.constant 0 : index
    %127 = vector.load %arg2[%c144, %c0_48] : memref<248x8xf32, #tpu.memory_space<vmem>>, vector<8x8xf32>
    %cst_49 = arith.constant dense<0.000000e+00> : vector<8x256xf32>
    %128 = tpu.matmul %127, %126, %cst_49 {dimension_numbers = #tpu.dot_dimension_numbers<[1], [0], [0], [1], [0, 0, 1, 1], [], []>} : vector<8x8xf32>, vector<8x256xf32>, vector<8x256xf32> -> vector<8x256xf32>
    %129 = arith.addf %122, %128 : vector<8x256xf32>
    %c16_i32_50 = arith.constant 16 : i32
    %130 = tpu.dynamic_rotate %121 by %c16_i32_50 dim 1 : vector<8x256xf32>, i32 -> vector<8x256xf32>
    %131 = vector.extract_strided_slice %2 {offsets = [1, 0], sizes = [1, 256], strides = [1, 1]} : vector<8x256xf32> to vector<1x256xf32>
    %132 = vector.broadcast %131 : vector<1x256xf32> to vector<8x256xf32>
    %133 = arith.mulf %130, %132 : vector<8x256xf32>
    %c152 = arith.constant 152 : index
    %c0_51 = arith.constant 0 : index
    %134 = vector.load %arg2[%c152, %c0_51] : memref<248x8xf32, #tpu.memory_space<vmem>>, vector<8x8xf32>
    %cst_52 = arith.constant dense<0.000000e+00> : vector<8x256xf32>
    %135 = tpu.matmul %134, %133, %cst_52 {dimension_numbers = #tpu.dot_dimension_numbers<[1], [0], [0], [1], [0, 0, 1, 1], [], []>} : vector<8x8xf32>, vector<8x256xf32>, vector<8x256xf32> -> vector<8x256xf32>
    %136 = arith.addf %129, %135 : vector<8x256xf32>
    %c15_i32_53 = arith.constant 15 : i32
    %137 = tpu.dynamic_rotate %121 by %c15_i32_53 dim 1 : vector<8x256xf32>, i32 -> vector<8x256xf32>
    %138 = vector.extract_strided_slice %2 {offsets = [2, 0], sizes = [1, 256], strides = [1, 1]} : vector<8x256xf32> to vector<1x256xf32>
    %139 = vector.broadcast %138 : vector<1x256xf32> to vector<8x256xf32>
    %140 = arith.mulf %137, %139 : vector<8x256xf32>
    %c160 = arith.constant 160 : index
    %c0_54 = arith.constant 0 : index
    %141 = vector.load %arg2[%c160, %c0_54] : memref<248x8xf32, #tpu.memory_space<vmem>>, vector<8x8xf32>
    %cst_55 = arith.constant dense<0.000000e+00> : vector<8x256xf32>
    %142 = tpu.matmul %141, %140, %cst_55 {dimension_numbers = #tpu.dot_dimension_numbers<[1], [0], [0], [1], [0, 0, 1, 1], [], []>} : vector<8x8xf32>, vector<8x256xf32>, vector<8x256xf32> -> vector<8x256xf32>
    %143 = arith.addf %136, %142 : vector<8x256xf32>
    %c1_i32_56 = arith.constant 1 : i32
    %144 = tpu.dynamic_rotate %121 by %c1_i32_56 dim 1 : vector<8x256xf32>, i32 -> vector<8x256xf32>
    %145 = vector.extract_strided_slice %2 {offsets = [3, 0], sizes = [1, 256], strides = [1, 1]} : vector<8x256xf32> to vector<1x256xf32>
    %146 = vector.broadcast %145 : vector<1x256xf32> to vector<8x256xf32>
    %147 = arith.mulf %144, %146 : vector<8x256xf32>
    %c168 = arith.constant 168 : index
    %c0_57 = arith.constant 0 : index
    %148 = vector.load %arg2[%c168, %c0_57] : memref<248x8xf32, #tpu.memory_space<vmem>>, vector<8x8xf32>
    %cst_58 = arith.constant dense<0.000000e+00> : vector<8x256xf32>
    %149 = tpu.matmul %148, %147, %cst_58 {dimension_numbers = #tpu.dot_dimension_numbers<[1], [0], [0], [1], [0, 0, 1, 1], [], []>} : vector<8x8xf32>, vector<8x256xf32>, vector<8x256xf32> -> vector<8x256xf32>
    %150 = arith.addf %143, %149 : vector<8x256xf32>
    %c176 = arith.constant 176 : index
    %c0_59 = arith.constant 0 : index
    %151 = vector.load %arg2[%c176, %c0_59] : memref<248x8xf32, #tpu.memory_space<vmem>>, vector<8x8xf32>
    %cst_60 = arith.constant dense<0.000000e+00> : vector<8x256xf32>
    %152 = tpu.matmul %151, %121, %cst_60 {dimension_numbers = #tpu.dot_dimension_numbers<[1], [0], [0], [1], [0, 0, 1, 1], [], []>} : vector<8x8xf32>, vector<8x256xf32>, vector<8x256xf32> -> vector<8x256xf32>
    %153 = arith.addf %150, %152 : vector<8x256xf32>
    %c255_i32_61 = arith.constant 255 : i32
    %154 = tpu.dynamic_rotate %121 by %c255_i32_61 dim 1 : vector<8x256xf32>, i32 -> vector<8x256xf32>
    %155 = vector.extract_strided_slice %2 {offsets = [4, 0], sizes = [1, 256], strides = [1, 1]} : vector<8x256xf32> to vector<1x256xf32>
    %156 = vector.broadcast %155 : vector<1x256xf32> to vector<8x256xf32>
    %157 = arith.mulf %154, %156 : vector<8x256xf32>
    %c184 = arith.constant 184 : index
    %c0_62 = arith.constant 0 : index
    %158 = vector.load %arg2[%c184, %c0_62] : memref<248x8xf32, #tpu.memory_space<vmem>>, vector<8x8xf32>
    %cst_63 = arith.constant dense<0.000000e+00> : vector<8x256xf32>
    %159 = tpu.matmul %158, %157, %cst_63 {dimension_numbers = #tpu.dot_dimension_numbers<[1], [0], [0], [1], [0, 0, 1, 1], [], []>} : vector<8x8xf32>, vector<8x256xf32>, vector<8x256xf32> -> vector<8x256xf32>
    %160 = arith.addf %153, %159 : vector<8x256xf32>
    %c241_i32_64 = arith.constant 241 : i32
    %161 = tpu.dynamic_rotate %121 by %c241_i32_64 dim 1 : vector<8x256xf32>, i32 -> vector<8x256xf32>
    %162 = vector.extract_strided_slice %2 {offsets = [5, 0], sizes = [1, 256], strides = [1, 1]} : vector<8x256xf32> to vector<1x256xf32>
    %163 = vector.broadcast %162 : vector<1x256xf32> to vector<8x256xf32>
    %164 = arith.mulf %161, %163 : vector<8x256xf32>
    %c192 = arith.constant 192 : index
    %c0_65 = arith.constant 0 : index
    %165 = vector.load %arg2[%c192, %c0_65] : memref<248x8xf32, #tpu.memory_space<vmem>>, vector<8x8xf32>
    %cst_66 = arith.constant dense<0.000000e+00> : vector<8x256xf32>
    %166 = tpu.matmul %165, %164, %cst_66 {dimension_numbers = #tpu.dot_dimension_numbers<[1], [0], [0], [1], [0, 0, 1, 1], [], []>} : vector<8x8xf32>, vector<8x256xf32>, vector<8x256xf32> -> vector<8x256xf32>
    %167 = arith.addf %160, %166 : vector<8x256xf32>
    %c240_i32_67 = arith.constant 240 : i32
    %168 = tpu.dynamic_rotate %121 by %c240_i32_67 dim 1 : vector<8x256xf32>, i32 -> vector<8x256xf32>
    %169 = vector.extract_strided_slice %2 {offsets = [6, 0], sizes = [1, 256], strides = [1, 1]} : vector<8x256xf32> to vector<1x256xf32>
    %170 = vector.broadcast %169 : vector<1x256xf32> to vector<8x256xf32>
    %171 = arith.mulf %168, %170 : vector<8x256xf32>
    %c200 = arith.constant 200 : index
    %c0_68 = arith.constant 0 : index
    %172 = vector.load %arg2[%c200, %c0_68] : memref<248x8xf32, #tpu.memory_space<vmem>>, vector<8x8xf32>
    %cst_69 = arith.constant dense<0.000000e+00> : vector<8x256xf32>
    %173 = tpu.matmul %172, %171, %cst_69 {dimension_numbers = #tpu.dot_dimension_numbers<[1], [0], [0], [1], [0, 0, 1, 1], [], []>} : vector<8x8xf32>, vector<8x256xf32>, vector<8x256xf32> -> vector<8x256xf32>
    %174 = arith.addf %167, %173 : vector<8x256xf32>
    %c239_i32_70 = arith.constant 239 : i32
    %175 = tpu.dynamic_rotate %121 by %c239_i32_70 dim 1 : vector<8x256xf32>, i32 -> vector<8x256xf32>
    %176 = vector.extract_strided_slice %2 {offsets = [7, 0], sizes = [1, 256], strides = [1, 1]} : vector<8x256xf32> to vector<1x256xf32>
    %177 = vector.broadcast %176 : vector<1x256xf32> to vector<8x256xf32>
    %178 = arith.mulf %175, %177 : vector<8x256xf32>
    %c208 = arith.constant 208 : index
    %c0_71 = arith.constant 0 : index
    %179 = vector.load %arg2[%c208, %c0_71] : memref<248x8xf32, #tpu.memory_space<vmem>>, vector<8x8xf32>
    %cst_72 = arith.constant dense<0.000000e+00> : vector<8x256xf32>
    %180 = tpu.matmul %179, %178, %cst_72 {dimension_numbers = #tpu.dot_dimension_numbers<[1], [0], [0], [1], [0, 0, 1, 1], [], []>} : vector<8x8xf32>, vector<8x256xf32>, vector<8x256xf32> -> vector<8x256xf32>
    %181 = arith.addf %174, %180 : vector<8x256xf32>
    %c216 = arith.constant 216 : index
    %c0_73 = arith.constant 0 : index
    %182 = vector.load %arg2[%c216, %c0_73] : memref<248x8xf32, #tpu.memory_space<vmem>>, vector<8x1xf32>
    %183 = vector.broadcast %182 : vector<8x1xf32> to vector<8x256xf32>
    %184 = arith.addf %181, %183 : vector<8x256xf32>
    %cst_74 = arith.constant 0.000000e+00 : f32
    %185 = vector.broadcast %cst_74 : f32 to vector<8x256xf32>
    %186 = arith.subf %185, %184 : vector<8x256xf32>
    %187 = math.exp %186 : vector<8x256xf32>
    %cst_75 = arith.constant 1.000000e+00 : f32
    %188 = vector.broadcast %cst_75 : f32 to vector<8x256xf32>
    %189 = arith.addf %188, %187 : vector<8x256xf32>
    %190 = tpu.reciprocal %189 {approx = true} : vector<8x256xf32> -> vector<8x256xf32>
    %191 = arith.mulf %184, %190 : vector<8x256xf32>
    %192 = arith.addf %109, %191 : vector<8x256xf32>
    %c224 = arith.constant 224 : index
    %c0_76 = arith.constant 0 : index
    %193 = vector.load %arg2[%c224, %c0_76] : memref<248x8xf32, #tpu.memory_space<vmem>>, vector<8x8xf32>
    %cst_77 = arith.constant dense<0.000000e+00> : vector<8x256xf32>
    %194 = tpu.matmul %193, %14, %cst_77 {dimension_numbers = #tpu.dot_dimension_numbers<[1], [0], [0], [1], [0, 0, 1, 1], [], []>} : vector<8x8xf32>, vector<8x256xf32>, vector<8x256xf32> -> vector<8x256xf32>
    %c232 = arith.constant 232 : index
    %c0_78 = arith.constant 0 : index
    %195 = vector.load %arg2[%c232, %c0_78] : memref<248x8xf32, #tpu.memory_space<vmem>>, vector<8x8xf32>
    %cst_79 = arith.constant dense<0.000000e+00> : vector<8x256xf32>
    %196 = tpu.matmul %195, %192, %cst_79 {dimension_numbers = #tpu.dot_dimension_numbers<[1], [0], [0], [1], [0, 0, 1, 1], [], []>} : vector<8x8xf32>, vector<8x256xf32>, vector<8x256xf32> -> vector<8x256xf32>
    %197 = arith.addf %194, %196 : vector<8x256xf32>
    %c240 = arith.constant 240 : index
    %c0_80 = arith.constant 0 : index
    %198 = vector.load %arg2[%c240, %c0_80] : memref<248x8xf32, #tpu.memory_space<vmem>>, vector<8x1xf32>
    %199 = vector.broadcast %198 : vector<8x1xf32> to vector<8x256xf32>
    %200 = arith.addf %197, %199 : vector<8x256xf32>
    %cst_81 = arith.constant 0.000000e+00 : f32
    %201 = vector.broadcast %cst_81 : f32 to vector<8x256xf32>
    %202 = arith.subf %201, %200 : vector<8x256xf32>
    %203 = math.exp %202 : vector<8x256xf32>
    %cst_82 = arith.constant 1.000000e+00 : f32
    %204 = vector.broadcast %cst_82 : f32 to vector<8x256xf32>
    %205 = arith.addf %204, %203 : vector<8x256xf32>
    %206 = tpu.reciprocal %205 {approx = true} : vector<8x256xf32> -> vector<8x256xf32>
    %207 = arith.mulf %200, %206 : vector<8x256xf32>
    %c0_83 = arith.constant 0 : index
    %c0_84 = arith.constant 0 : index
    %c0_85 = arith.constant 0 : index
    %208 = vector.load %arg4[%c0_83, %c0_84, %c0_85] : memref<1x8x256xf32, #tpu.memory_space<vmem>>, vector<1x8x256xf32>
    %209 = vector.shape_cast %208 : vector<1x8x256xf32> to vector<8x256xf32>
    %210 = vector.shape_cast %207 : vector<8x256xf32> to vector<1x8x256xf32>
    tpu.vector_store %arg4[%c0_83, %c0_84, %c0_85], %210 {strides = array<i32>} : memref<1x8x256xf32, #tpu.memory_space<vmem>>, vector<1x8x256xf32>,
    return
  }
  func.func @transform_0(%arg0: i32) -> (i32, i32, i32) {
    %c0_i32 = arith.constant 0 : i32
    %c0_i32_0 = arith.constant 0 : i32
    %c0_i32_1 = arith.constant 0 : i32
    return %arg0, %c0_i32, %c0_i32_0 : i32, i32, i32
  }
  func.func @transform_1(%arg0: i32) -> (i32, i32) {
    %c0_i32 = arith.constant 0 : i32
    %c0_i32_0 = arith.constant 0 : i32
    %c0_i32_1 = arith.constant 0 : i32
    return %c0_i32, %c0_i32_0 : i32, i32
  }
  func.func @transform_2(%arg0: i32) -> (i32, i32) {
    %c0_i32 = arith.constant 0 : i32
    %c0_i32_0 = arith.constant 0 : i32
    %c0_i32_1 = arith.constant 0 : i32
    return %c0_i32, %c0_i32_0 : i32, i32
  }
  func.func @transform_3(%arg0: i32) -> (i32, i32, i32) {
    %c0_i32 = arith.constant 0 : i32
    %c0_i32_0 = arith.constant 0 : i32
    %c0_i32_1 = arith.constant 0 : i32
    return %arg0, %c0_i32, %c0_i32_0 : i32, i32, i32
  }
}

</mosaic_0001>

<bundles_post_ra>
// kernel: tpu_custom_call.1
= control target key start
LH: loop header
LB: loop body
LE: loop exit
PB: predicated region body
PF: predicated region fallthrough
CT: control target
= control target key end

     0   :  { %8 = vsyncpa [#allocation3], 0  ;;  %s2343_s0 = inlined_call_operand.vmem [shape: f32[2,8,256], index: 0, kind: input, shape index: {}]   ;;  %s2344_s1 = inlined_call_operand.vmem [shape: f32[248,8], index: 1, kind: input, shape index: {}]   ;;  %s2345_s2 = inlined_call_operand.vmem [shape: f32[8,256], index: 2, kind: input, shape index: {}]   ;;  %s2346_s3 = inlined_call_operand.hbm [shape: f32[2,8,256], index: 3, kind: output, shape index: {}]  }
   0x1   :  { %10 = vsyncpa [#allocation3 + $0x1], 0  ;;  %s1888_s12 = smov 0   ;;  %s1890_s13 = smov 0  }
   0x2   :  { %s1892_s14 = smov 0   ;;  %s1894_s15 = smov 0  }
   0x3 LB: > { %s1909_s16 = sadd.s32 4294967295, %s1857_s15   ;;  %s1626_s17 = sadd.s32 4294967294, %s1857_s15   ;;  %s1857_s15 = sphi %s1894_s15, %s2352_s15   ;;  %s1853_s14 = sphi %s1892_s14, %s2351_s14   ;;  %s1849_s13 = sphi %s1890_s13, %s2350_s13   ;;  %s1845_s12 = sphi %s1888_s12, %s2349_s12  }
   0x4   : > { %s1913_s18 = sadd.s32 1, %s1857_s15   ;;  %s91_s19 = sadd.s32 1, %s1853_s14 }
   0x5   : > { %s88_s20 = ssub.s32 %s1857_s15, %s1913_s18  ;;  %p101_p0 = scmp.ne.s32.totalorder %s1853_s14, %s1849_s13 }
   0x6   : > { %p89_p1 = scmp.eq.s32.totalorder %s88_s20, 0  ;;  %p102_p2 = scmp.eq.s32.totalorder %s1909_s16, 1 }
   0x7   : > { %p107_p3 = scmp.ne.s32.totalorder %s1849_s13, %s1845_s12  ;;  %p108_p4 = scmp.eq.s32.totalorder %s1626_s17, 1 }
   0x8   : > { %s1924_s21 = scalar_select %p89_p1, %s1853_s14, %s91_s19  }
   0x9   : > { %p1926_p5 = por %p102_p2, %p101_p0  ;;  %p1930_p6 = por %p108_p4, %p107_p3 }
   0xa   : > { %p1629_p7 = scmp.ge.s32.totalorder %s1857_s15, 1  ;;  %p140_p8 = scmp.lt.s32.totalorder %s1857_s15, 3 }
   0xc   : > { %p141_p9 = pnand %p1629_p7, %p140_p8 }
   0xd   : > { %p164_p10 = scmp.lt.s32.totalorder (!%p141_p9), %s1909_s16, 1  ;;  %s1860_s17 = smov (!%p141_p9), 17  }
   0xe   : > { %144 = sbr.rel (%p141_p9) target bundleno = 1274 (0x4fa), region = 32  ;;  %s1861_s19 = smov (!%p141_p9), 15  }
   0xf   : > { %s1862_s20 = smov (!%p141_p9), 16   ;;  %s1863_s24 = smov (!%p141_p9), 1  }
  0x10   : > { %s1864_s25 = smov (!%p141_p9), 127   ;;  %s161_s28 = sand.u32 (!%p141_p9), 1, %s1849_s13  }
  0x11   : > { %s1630_s29 = sshll.u32 (!%p141_p9), %s161_s28, 4  ;;  %s1687_s4 = sshll.u32 (!%p141_p9), %s1909_s16, 4 }
  0x12   : > { %s1562_s7 = scalar_lea.hbm (!%p141_p9), %s2346_s3, %s1687_s4  ;;  %s163_s8 = scalar_lea.vmem (!%p141_p9), [#allocation2], %s1630_s29 }
  0x13   : > { %v237_v0 = vld [vmem:[%s2344_s1 + $0x18] sm:$0xff]  ;;  %v1859_v1 = vmov 0   ;;  %s165_s26 = scalar_select %p164_p10, %s1909_s16, 1  ;;  %vm180_vm0 = vcmask 64512   ;;  %v236_v2 = vld [vmem:[%s2344_s1 + $0x10] sm:$0xff]  ;;  %v299_v5 = vld [vmem:[%s2344_s1 + $0x28] sm:$0xff]  ;;  %v364_v47 = vlaneseq }
  0x14   : > { %1736 = vset.pattern.permute.xlu0 %v1859_v1  ;;  %1737 = vset.pattern.permute.xlu1 %v1859_v1  ;;  %v173_v6 = vld [vmem:[%s2344_s1] sm:$0xff]  ;;  %v860_v44 = vld [vmem:[%s2344_s1 + $0x78] sm:$0xff]  ;;  %v2011_v53 = vld [vmem:[%s2345_s2 + $0x8] sm:$0xff]  ;;  %s1564_s9 = sshll.u32 %s163_s8, 4  ;;  %s1565_s9 = int_to_ptr.vmem [resolvable:$true] %s1564_s9 }
  0x15   : > { %240 = vperm.xlu0 %1736, %v237_v0   ;;  %1738 = vset.pattern.permute.xlu2 %v1859_v1  ;;  %s1686_s27 = sshll.u32 %s165_s26, 4  ;;  %v298_v23 = vld [vmem:[%s2344_s1 + $0x20] sm:$0xff]  ;;  %s1865_s26 = smov 111   ;;  %v2001_v50 = vand.u32 127, %v364_v47  ;;  %v382_v55 = vperm.slane %v2011_v53, 1  ;;  %v480_v58 = vperm.slane %v2011_v53, 2 }
  0x16   : > { %s168_s30 = scalar_lea.vmem %s2343_s0, %s1686_s27  ;;  %s1866_s27 = smov 113   ;;  %v2006_v52 = vld [vmem:[%s2345_s2] sm:$0xff] }
  0x17   : > { %v169_v3 = vld [vmem:[%s168_s30] sm:$0xff]  ;;  %v170_v4 = vld [vmem:[%s168_s30 + $0x8] sm:$0xff]  ;;  %s1867_s30 = smov 112   ;;  %vm476_vm1 = vcmp.lt.s32.totalorder %v2001_v50, 15  ;;  %vm378_vm2 = vcmp.lt.s32.totalorder %v2001_v50, 16  ;;  %v381_v54 = vperm.slane %v2006_v52, 1 }
  0x18   : > { %261 = vmatpush.msra.mxu2 %v169_v3  ;;  %281 = vmatpush.msra.mxu3 %v170_v4  ;;  %v479_v57 = vperm.slane %v2006_v52, 2  ;;  %vm366_vm3 = vcmp.lt.s32.totalorder %v2001_v50, 17  ;;  %vm533_vm4 = vcmp.lt.s32.totalorder %v2001_v50, 1  ;;  %vm807_vm5 = vcmp.lt.s32.totalorder %v2001_v50, 111 }
  0x19   : > { %1635 = vmatmul.msk.f32.vlgmr.msra.gmra.mxu2 %vm180_vm0, %v236_v2  ;;  %1636 = vmatmul.msk.f32.vlgmr.msra.gmra.mxu3 %vm180_vm0, %v236_v2  ;;  %v385_v2 = vld [vmem:[%s2344_s1 + $0x38] sm:$0xff]  ;;  %vm693_vm6 = vcmp.lt.s32.totalorder %v2001_v50, 113  ;;  %vm636_vm7 = vcmp.lt.s32.totalorder %v2001_v50, 127  ;;  %vm750_vm8 = vcmp.lt.s32.totalorder %v2001_v50, 112  ;;  %v1372_v50 = vld [vmem:[%s2344_s1 + $0xd0] sm:$0xff] }
  0x1a   : > { %199 = vmatpush.msra.mxu0 %v169_v3  ;;  %219 = vmatpush.msra.mxu1 %v170_v4 }
  0x1b   : > { %1633 = vmatmul.msk.f32.vlgmr.msra.gmra.mxu0 %vm180_vm0, %v173_v6  ;;  %1634 = vmatmul.msk.f32.vlgmr.msra.gmra.mxu1 %vm180_vm0, %v173_v6  ;;  %v369_v6 = vperm.slane %v2006_v52, 0 }
  0x1d   : > { %302 = vperm.xlu0 %1736, %v299_v5  }
  0x87   : > { %v241_v7 = vpop.permute.xlu0 %240 }
  0x8f   : > { %v303_v27 = vpop.permute.xlu0 %302 }
  0x98   : > { %v1968_v25 = vpop.f32.mrf.mxu0  ;;  %v1970_v26 = vpop.f32.mrf.mxu1 }
  0x9c   : > { %v263_v8 = vpop.f32.mrf.mxu2  ;;  %v283_v9 = vpop.f32.mrf.mxu3 }
  0x9d   : > { %v264_v10 = vadd.f32 %v263_v8, %v241_v7  ;;  %v284_v11 = vadd.f32 %v283_v9, %v241_v7  ;;  %v370_v7 = vperm.slane %v2011_v53, 0 }
  0x9f   : > { %v286_v12 = vsub.f32 0.0, %v264_v10  ;;  %v287_v13 = vsub.f32 0.0, %v284_v11 }
  0xa1   : > { %v288_v14 = vmul.f32 1.442695, %v286_v12  ;;  %v290_v15 = vmul.f32 1.442695, %v287_v13 }
  0xa3   : > { %1739 = vpow2.f32 %v288_v14 }
  0xa4   : > { %1741 = vpow2.f32 %v290_v15 }
  0xa9   : > { %v1740_v16 = vpop.eup %1739 }
  0xaa   : > { %v1742_v17 = vpop.eup %1741  ;;  %v292_v18 = vadd.f32 1.0, %v1740_v16 }
  0xab   : > { %v293_v19 = vadd.f32 1.0, %v1742_v17 }
  0xac   : > { %1743 = vrcp.f32 %v292_v18  ;;  %v373_v18 = vld [vmem:[%s2344_s1 + $0x30] sm:$0xff] }
  0xad   : > { %1745 = vrcp.f32 %v293_v19  ;;  %v483_v19 = vld [vmem:[%s2344_s1 + $0x40] sm:$0xff] }
  0xb2   : > { %v1744_v20 = vpop.eup %1743 }
  0xb3   : > { %v1746_v21 = vpop.eup %1745  ;;  %v1957_v22 = vmul.f32 %v1744_v20, %v264_v10  ;;  %v536_v10 = vperm.slane %v2006_v52, 3 }
  0xb4   : > { %v1962_v24 = vmul.f32 %v1746_v21, %v284_v11  ;;  %v537_v11 = vperm.slane %v2011_v53, 3 }
  0xb5   : > { %323 = vmatpush.msrb.mxu0 %v1957_v22 }
  0xb6   : > { %343 = vmatpush.msrb.mxu1 %v1962_v24  ;;  %1637 = vmatmul.msk.f32.vlgmr.msrb.gmra.mxu0 %vm180_vm0, %v298_v23 }
  0xb7   : > { %1638 = vmatmul.msk.f32.vlgmr.msrb.gmra.mxu1 %vm180_vm0, %v298_v23  ;;  %v696_v23 = vperm.slane %v2006_v52, 5 }
 0x133   : > { %v325_v28 = vpop.f32.mrf.mxu0 }
 0x134   : > { %v326_v29 = vadd.f32 %v325_v28, %v303_v27  ;;  %v345_v30 = vpop.f32.mrf.mxu1 }
 0x135   : > { %v346_v31 = vadd.f32 %v345_v30, %v303_v27  ;;  %v697_v27 = vperm.slane %v2011_v53, 5  ;;  %v811_v30 = vperm.slane %v2011_v53, 7 }
 0x136   : > { %v348_v32 = vsub.f32 0.0, %v326_v29 }
 0x137   : > { %v349_v33 = vsub.f32 0.0, %v346_v31 }
 0x138   : > { %v350_v34 = vmul.f32 1.442695, %v348_v32 }
 0x139   : > { %v352_v35 = vmul.f32 1.442695, %v349_v33 }
 0x13a   : > { %1747 = vpow2.f32 %v350_v34 }
 0x13b   : > { %1749 = vpow2.f32 %v352_v35 }
 0x140   : > { %v1748_v36 = vpop.eup %1747 }
 0x141   : > { %v354_v37 = vadd.f32 1.0, %v1748_v36  ;;  %v1750_v38 = vpop.eup %1749 }
 0x142   : > { %v355_v39 = vadd.f32 1.0, %v1750_v38 }
 0x143   : > { %1751 = vrcp.f32 %v354_v37 }
 0x144   : > { %1753 = vrcp.f32 %v355_v39  ;;  %v540_v39 = vld [vmem:[%s2344_s1 + $0x48] sm:$0xff] }
 0x149   : > { %v1752_v40 = vpop.eup %1751 }
 0x14a   : > { %v1972_v41 = vmul.f32 %v1752_v40, %v326_v29  ;;  %v1754_v42 = vpop.eup %1753  ;;  %v810_v29 = vperm.slane %v2006_v52, 7 }
 0x14b   : > { %v359_v43 = vmul.f32 %v1754_v42, %v346_v31  ;;  %v586_v42 = vld [vmem:[%s2344_s1 + $0x50] sm:$0xff] }
 0x14c   : > { %360 = vrot.lane.b32.xlu0 %v1972_v41, %s1860_s17  ;;  %472 = vrot.lane.b32.xlu2 %v1972_v41, %s1861_s19 }
 0x14d   : > { %374 = vrot.lane.b32.xlu1 %v1972_v41, %s1862_s20 }
 0x154   : > { %531 = vrot.lane.b32.xlu0 %v359_v43, %s1863_s24  ;;  %474 = vrot.lane.b32.xlu2 %v359_v43, %s1861_s19 }
 0x155   : > { %376 = vrot.lane.b32.xlu1 %v359_v43, %s1862_s20 }
 0x15c   : > { %632 = vrot.lane.b32.xlu0 %v1972_v41, %s1864_s25  ;;  %529 = vrot.lane.b32.xlu2 %v1972_v41, %s1863_s24 }
 0x15d   : > { %362 = vrot.lane.b32.xlu1 %v359_v43, %s1860_s17 }
 0x164   : > { %805 = vrot.lane.b32.xlu0 %v359_v43, %s1865_s26  ;;  %691 = vrot.lane.b32.xlu2 %v359_v43, %s1866_s27 }
 0x165   : > { %689 = vrot.lane.b32.xlu1 %v1972_v41, %s1866_s27 }
 0x16c   : > { %863 = vperm.xlu0 %1736, %v860_v44   ;;  %803 = vrot.lane.b32.xlu2 %v1972_v41, %s1865_s26  ;;  %v640_v44 = vperm.slane %v2011_v53, 4 }
 0x16d   : > { %634 = vrot.lane.b32.xlu1 %v359_v43, %s1864_s25 }
 0x174   : > { %748 = vrot.lane.b32.xlu2 %v359_v43, %s1867_s30 }
 0x175   : > { %746 = vrot.lane.b32.xlu1 %v1972_v41, %s1867_s30 }
 0x1a6   : > { %v473_v45 = vpop.permute.xlu2 %472 }
 0x1ae   : > { %v475_v46 = vpop.permute.xlu2 %474 }
 0x1af   : > { %v477_v60 = vsel %vm476_vm1, %v473_v45, %v475_v46  ;;  %v478_v61 = vsel %vm476_vm1, %v475_v46, %v473_v45 }
 0x1b0   : > { %v481_v3 = vmul.f32 %v479_v57, %v478_v61  ;;  %v482_v4 = vmul.f32 %v480_v58, %v477_v60  ;;  %v754_v60 = vperm.slane %v2011_v53, 6 }
 0x1b6   : > { %v530_v51 = vpop.permute.xlu2 %529 }
 0x1be   : > { %v361_v48 = vpop.permute.xlu0 %360  ;;  %v692_v5 = vpop.permute.xlu2 %691 }
 0x1bf   : > { %v375_v49 = vpop.permute.xlu1 %374 }
 0x1c6   : > { %v532_v56 = vpop.permute.xlu0 %531  ;;  %v804_v28 = vpop.permute.xlu2 %803 }
 0x1c7   : > { %v377_v59 = vpop.permute.xlu1 %376  ;;  %v534_v14 = vsel %vm533_vm4, %v530_v51, %v532_v56  ;;  %v535_v15 = vsel %vm533_vm4, %v532_v56, %v530_v51  ;;  %v643_v51 = vld [vmem:[%s2344_s1 + $0x58] sm:$0xff]  ;;  %v700_v56 = vld [vmem:[%s2344_s1 + $0x60] sm:$0xff] }
 0x1c8   : > { %v379_v62 = vsel %vm378_vm2, %v375_v49, %v377_v59  ;;  %v380_v63 = vsel %vm378_vm2, %v377_v59, %v375_v49  ;;  %v538_v20 = vmul.f32 %v536_v10, %v535_v15  ;;  %v539_v21 = vmul.f32 %v537_v11, %v534_v14 }
 0x1c9   : > { %v383_v0 = vmul.f32 %v381_v54, %v380_v63  ;;  %v384_v1 = vmul.f32 %v382_v55, %v379_v62  ;;  %v753_v59 = vperm.slane %v2006_v52, 6 }
 0x1cb   : > { %404 = vmatpush.msrb.mxu2 %v383_v0  ;;  %424 = vmatpush.msrb.mxu3 %v384_v1 }
 0x1cc   : > { %1639 = vmatmul.msk.f32.vlgmr.msrb.gmra.mxu2 %vm180_vm0, %v385_v2  ;;  %1640 = vmatmul.msk.f32.vlgmr.msrb.gmra.mxu3 %vm180_vm0, %v385_v2 }
 0x1cd   : > { %502 = vmatpush.msra.mxu2 %v481_v3  ;;  %522 = vmatpush.msra.mxu3 %v482_v4  ;;  %v757_v3 = vld [vmem:[%s2344_s1 + $0x68] sm:$0xff]  ;;  %v814_v4 = vld [vmem:[%s2344_s1 + $0x70] sm:$0xff] }
 0x1ce   : > { %v633_v8 = vpop.permute.xlu0 %632  ;;  %v749_v61 = vpop.permute.xlu2 %748 }
 0x1cf   : > { %605 = vmatpush.msrb.mxu2 %v1972_v41  ;;  %625 = vmatpush.msrb.mxu3 %v359_v43  ;;  %v363_v9 = vpop.permute.xlu1 %362  ;;  %v639_v43 = vperm.slane %v2006_v52, 4 }
 0x1d0   : > { %v367_v12 = vsel %vm366_vm3, %v361_v48, %v363_v9  ;;  %v368_v13 = vsel %vm366_vm3, %v363_v9, %v361_v48 }
 0x1d1   : > { %v371_v16 = vmul.f32 %v369_v6, %v368_v13  ;;  %v372_v17 = vmul.f32 %v370_v7, %v367_v12 }
 0x1d3   : > { %447 = vmatpush.msra.mxu0 %v371_v16  ;;  %467 = vmatpush.msra.mxu1 %v372_v17 }
 0x1d4   : > { %1641 = vmatmul.msk.f32.vlgmr.msra.gmra.mxu0 %vm180_vm0, %v373_v18  ;;  %1642 = vmatmul.msk.f32.vlgmr.msra.gmra.mxu1 %vm180_vm0, %v373_v18 }
 0x1d5   : > { %1643 = vmatmul.msk.f32.vlgmr.msra.gmra.mxu2 %vm180_vm0, %v483_v19  ;;  %1644 = vmatmul.msk.f32.vlgmr.msra.gmra.mxu3 %vm180_vm0, %v483_v19 }
 0x1d6   : > { %559 = vmatpush.msrb.mxu0 %v538_v20  ;;  %579 = vmatpush.msrb.mxu1 %v539_v21  ;;  %v806_v31 = vpop.permute.xlu0 %805 }
 0x1d7   : > { %v808_v32 = vsel %vm807_vm5, %v804_v28, %v806_v31  ;;  %v809_v33 = vsel %vm807_vm5, %v806_v31, %v804_v28  ;;  %v690_v34 = vpop.permute.xlu1 %689 }
 0x1d8   : > { %v694_v35 = vsel %vm693_vm6, %v690_v34, %v692_v5  ;;  %v695_v36 = vsel %vm693_vm6, %v692_v5, %v690_v34  ;;  %v812_v40 = vmul.f32 %v810_v29, %v808_v32  ;;  %v813_v41 = vmul.f32 %v811_v30, %v809_v33 }
 0x1d9   : > { %v698_v37 = vmul.f32 %v696_v23, %v694_v35  ;;  %v699_v38 = vmul.f32 %v697_v27, %v695_v36 }
 0x1db   : > { %719 = vmatpush.msra.mxu2 %v698_v37  ;;  %739 = vmatpush.msra.mxu3 %v699_v38 }
 0x1dc   : > { %1645 = vmatmul.msk.f32.vlgmr.msrb.gmra.mxu0 %vm180_vm0, %v540_v39  ;;  %1646 = vmatmul.msk.f32.vlgmr.msrb.gmra.mxu1 %vm180_vm0, %v540_v39 }
 0x1dd   : > { %1647 = vmatmul.msk.f32.vlgmr.msrb.gmra.mxu2 %vm180_vm0, %v586_v42  ;;  %1648 = vmatmul.msk.f32.vlgmr.msrb.gmra.mxu3 %vm180_vm0, %v586_v42 }
 0x1de   : > { %833 = vmatpush.msrb.mxu2 %v812_v40  ;;  %853 = vmatpush.msrb.mxu3 %v813_v41 }
 0x1df   : > { %v635_v45 = vpop.permute.xlu1 %634 }
 0x1e0   : > { %v637_v46 = vsel %vm636_vm7, %v633_v8, %v635_v45  ;;  %v638_v47 = vsel %vm636_vm7, %v635_v45, %v633_v8 }
 0x1e1   : > { %v641_v48 = vmul.f32 %v639_v43, %v637_v46  ;;  %v642_v49 = vmul.f32 %v640_v44, %v638_v47 }
 0x1e3   : > { %662 = vmatpush.msra.mxu0 %v641_v48  ;;  %682 = vmatpush.msra.mxu1 %v642_v49  ;;  %v883_v49 = vld [vmem:[%s2344_s1 + $0x88] sm:$0xff] }
 0x1e4   : > { %1649 = vmatmul.msk.f32.vlgmr.msra.gmra.mxu0 %vm180_vm0, %v643_v51  ;;  %1650 = vmatmul.msk.f32.vlgmr.msra.gmra.mxu1 %vm180_vm0, %v643_v51 }
 0x1e5   : > { %1651 = vmatmul.msk.f32.vlgmr.msra.gmra.mxu2 %vm180_vm0, %v700_v56  ;;  %1652 = vmatmul.msk.f32.vlgmr.msra.gmra.mxu3 %vm180_vm0, %v700_v56 }
 0x1e6   : > { %886 = vperm.xlu1 %1737, %v883_v49  }
 0x1e7   : > { %v747_v62 = vpop.permute.xlu1 %746 }
 0x1e8   : > { %v751_v63 = vsel %vm750_vm8, %v747_v62, %v749_v61  ;;  %v752_v0 = vsel %vm750_vm8, %v749_v61, %v747_v62 }
 0x1e9   : > { %v755_v1 = vmul.f32 %v753_v59, %v751_v63  ;;  %v756_v2 = vmul.f32 %v754_v60, %v752_v0  ;;  %v864_v63 = vpop.permute.xlu0 %863 }
 0x1eb   : > { %776 = vmatpush.msrb.mxu0 %v755_v1  ;;  %796 = vmatpush.msrb.mxu1 %v756_v2 }
 0x1ec   : > { %1653 = vmatmul.msk.f32.vlgmr.msrb.gmra.mxu0 %vm180_vm0, %v757_v3  ;;  %1654 = vmatmul.msk.f32.vlgmr.msrb.gmra.mxu1 %vm180_vm0, %v757_v3 }
 0x1ed   : > { %1655 = vmatmul.msk.f32.vlgmr.msrb.gmra.mxu2 %vm180_vm0, %v814_v4  ;;  %1656 = vmatmul.msk.f32.vlgmr.msrb.gmra.mxu3 %vm180_vm0, %v814_v4 }
 0x24f   : > { %v406_v5 = vpop.f32.mrf.mxu2  ;;  %v426_v8 = vpop.f32.mrf.mxu3 }
 0x251   : > { %v449_v9 = vpop.f32.mrf.mxu0  ;;  %v469_v12 = vpop.f32.mrf.mxu1 }
 0x252   : > { %v450_v17 = vadd.f32 %v449_v9, %v406_v5  ;;  %v470_v18 = vadd.f32 %v469_v12, %v426_v8 }
 0x258   : > { %v504_v13 = vpop.f32.mrf.mxu2  ;;  %v524_v14 = vpop.f32.mrf.mxu3 }
 0x259   : > { %v561_v15 = vpop.f32.mrf.mxu0  ;;  %v581_v16 = vpop.f32.mrf.mxu1  ;;  %v527_v19 = vadd.f32 %v504_v13, %v450_v17  ;;  %v528_v20 = vadd.f32 %v524_v14, %v470_v18 }
 0x25b   : > { %v584_v33 = vadd.f32 %v561_v15, %v527_v19  ;;  %v585_v34 = vadd.f32 %v581_v16, %v528_v20  ;;  %v882_v19 = vld [vmem:[%s2344_s1 + $0x80] sm:$0xff] }
 0x260   : > { %v607_v21 = vpop.f32.mrf.mxu2  ;;  %v627_v28 = vpop.f32.mrf.mxu3 }
 0x261   : > { %v664_v31 = vpop.f32.mrf.mxu0  ;;  %v684_v32 = vpop.f32.mrf.mxu1  ;;  %v630_v35 = vadd.f32 %v607_v21, %v584_v33  ;;  %v631_v36 = vadd.f32 %v627_v28, %v585_v34 }
 0x262   : > { %v887_v21 = vpop.permute.xlu1 %886 }
 0x263   : > { %v687_v39 = vadd.f32 %v664_v31, %v630_v35  ;;  %v688_v40 = vadd.f32 %v684_v32, %v631_v36 }
 0x268   : > { %v721_v37 = vpop.f32.mrf.mxu2  ;;  %v741_v38 = vpop.f32.mrf.mxu3 }
 0x269   : > { %v744_v41 = vadd.f32 %v721_v37, %v687_v39  ;;  %v745_v42 = vadd.f32 %v741_v38, %v688_v40  ;;  %v778_v45 = vpop.f32.mrf.mxu0  ;;  %v798_v46 = vpop.f32.mrf.mxu1 }
 0x26b   : > { %v801_v47 = vadd.f32 %v778_v45, %v744_v41  ;;  %v802_v48 = vadd.f32 %v798_v46, %v745_v42  ;;  %v1418_v46 = vld [vmem:[%s2344_s1 + $0xd8] sm:$0xff] }
 0x270   : > { %v835_v51 = vpop.f32.mrf.mxu2  ;;  %v855_v56 = vpop.f32.mrf.mxu3 }
 0x271   : > { %v858_v61 = vadd.f32 %v835_v51, %v801_v47  ;;  %v859_v62 = vadd.f32 %v855_v56, %v802_v48  ;;  %v174_v47 = vld [vmem:[%s2344_s1 + $0x8] sm:$0xff] }
 0x273   : > { %v866_v0 = vadd.f32 %v864_v63, %v858_v61  ;;  %v867_v1 = vadd.f32 %v864_v63, %v859_v62 }
 0x275   : > { %v868_v2 = vsub.f32 0.0, %v866_v0  ;;  %v869_v3 = vsub.f32 0.0, %v867_v1 }
 0x277   : > { %v870_v4 = vmul.f32 1.442695, %v868_v2  ;;  %v872_v5 = vmul.f32 1.442695, %v869_v3 }
 0x279   : > { %1755 = vpow2.f32 %v870_v4 }
 0x27a   : > { %1757 = vpow2.f32 %v872_v5 }
 0x27f   : > { %v1756_v8 = vpop.eup %1755 }
 0x280   : > { %v1758_v9 = vpop.eup %1757  ;;  %v874_v12 = vadd.f32 1.0, %v1756_v8  ;;  %v961_v8 = vld [vmem:[%s2344_s1 + $0x98] sm:$0xff] }
 0x281   : > { %v875_v13 = vadd.f32 1.0, %v1758_v9 }
 0x282   : > { %1759 = vrcp.f32 %v874_v12 }
 0x283   : > { %1761 = vrcp.f32 %v875_v13  ;;  %v952_v13 = vld [vmem:[%s2344_s1 + $0x90] sm:$0xff] }
 0x288   : > { %v1760_v14 = vpop.eup %1759 }
 0x289   : > { %v1762_v15 = vpop.eup %1761  ;;  %v878_v16 = vmul.f32 %v1760_v14, %v866_v0 }
 0x28a   : > { %v879_v17 = vmul.f32 %v1762_v15, %v867_v1  ;;  %v1056_v15 = vld [vmem:[%s2344_s1 + $0xa0] sm:$0xff] }
 0x28b   : > { %v2151_v18 = vadd.f32 %v878_v16, %v1957_v22 }
 0x28c   : > { %v2157_v20 = vadd.f32 %v879_v17, %v1962_v24 }
 0x28d   : > { %907 = vmatpush.msra.mxu0 %v2151_v18 }
 0x28e   : > { %927 = vmatpush.msra.mxu1 %v2157_v20  ;;  %1657 = vmatmul.msk.f32.vlgmr.msra.gmra.mxu0 %vm180_vm0, %v882_v19 }
 0x28f   : > { %1658 = vmatmul.msk.f32.vlgmr.msra.gmra.mxu1 %vm180_vm0, %v882_v19 }
 0x30b   : > { %v909_v28 = vpop.f32.mrf.mxu0 }
 0x30c   : > { %v929_v31 = vpop.f32.mrf.mxu1  ;;  %v910_v22 = vadd.f32 %v909_v28, %v887_v21 }
 0x30d   : > { %v930_v32 = vadd.f32 %v929_v31, %v887_v21 }
 0x30e   : > { %v932_v33 = vsub.f32 0.0, %v910_v22 }
 0x30f   : > { %v933_v34 = vsub.f32 0.0, %v930_v32 }
 0x310   : > { %v934_v35 = vmul.f32 1.442695, %v932_v33  ;;  %v1110_v33 = vld [vmem:[%s2344_s1 + $0xa8] sm:$0xff] }
 0x311   : > { %v936_v36 = vmul.f32 1.442695, %v933_v34  ;;  %v1156_v34 = vld [vmem:[%s2344_s1 + $0xb0] sm:$0xff] }
 0x312   : > { %1763 = vpow2.f32 %v934_v35 }
 0x313   : > { %1765 = vpow2.f32 %v936_v36 }
 0x318   : > { %v1764_v24 = vpop.eup %1763 }
 0x319   : > { %v1766_v37 = vpop.eup %1765  ;;  %v938_v38 = vadd.f32 1.0, %v1764_v24 }
 0x31a   : > { %v939_v39 = vadd.f32 1.0, %v1766_v37  ;;  %v1210_v37 = vld [vmem:[%s2344_s1 + $0xb8] sm:$0xff] }
 0x31b   : > { %1767 = vrcp.f32 %v938_v38  ;;  %v1264_v38 = vld [vmem:[%s2344_s1 + $0xc0] sm:$0xff] }
 0x31c   : > { %1769 = vrcp.f32 %v939_v39 }
 0x321   : > { %v1768_v40 = vpop.eup %1767 }
 0x322   : > { %v1770_v41 = vpop.eup %1769  ;;  %v942_v42 = vmul.f32 %v1768_v40, %v910_v22 }
 0x323   : > { %v943_v45 = vmul.f32 %v1770_v41, %v930_v32 }
 0x324   : > { %1048 = vrot.lane.b32.xlu1 %v942_v42, %s1861_s19  ;;  %953 = vrot.lane.b32.xlu2 %v942_v42, %s1862_s20 }
 0x325   : > { %955 = vrot.lane.b32.xlu0 %v943_v45, %s1862_s20 }
 0x32c   : > { %946 = vrot.lane.b32.xlu1 %v943_v45, %s1860_s17  ;;  %1050 = vrot.lane.b32.xlu2 %v943_v45, %s1861_s19  ;;  %s1566_s19 = sshll.u32 %s1562_s7, 4  ;;  %s1567_s19 = int_to_ptr.hbm [resolvable:$true] %s1566_s19 }
 0x32d   : > { %944 = vrot.lane.b32.xlu0 %v942_v42, %s1860_s17  ;;  %s1551_s17 = scalar_lea.sflag [#allocation3], %s161_s28  ;;  %s1809_s16 = sshra.s32 %s1567_s19, 4  ;;  %s1810_s16 = int_to_ptr.hbm [resolvable:$true] %s1809_s16 }
 0x32e   : > { %s1811_s20 = scalar_lea.hbm %s1810_s16, 16  ;;  %p1816_p0 = scmp.lt.s32.totalorder %s1810_s16, %s2346_s3 }
 0x32f   : > { %p1812_p11 = scmp.ne.s32.totalorder %s1810_s16, %s1811_s20 }
 0x331   : > { %p1813_p12 = pnand %p1812_p11, %p1926_p5 }
 0x333   : > { %p1814_p13 = pneg %p1813_p12 }
 0x334   : > { %1256 = vrot.lane.b32.xlu1 %v942_v42, %s1866_s27  ;;  %1102 = vrot.lane.b32.xlu2 %v942_v42, %s1863_s24 }
 0x335   : > { %1104 = vrot.lane.b32.xlu0 %v943_v45, %s1863_s24 }
 0x33c   : > { %1204 = vrot.lane.b32.xlu1 %v943_v45, %s1864_s25  ;;  %1258 = vrot.lane.b32.xlu2 %v943_v45, %s1866_s27 }
 0x33d   : > { %1202 = vrot.lane.b32.xlu0 %v942_v42, %s1864_s25  ;;  %s1815_s25 = scalar_lea.hbm %s2346_s3, 32 }
 0x33e   : > { %p1817_p1 = scmp.lt.s32.totalorder %s1815_s25, %s1811_s20 }
 0x340   : > { %p1818_p2 = por %p1817_p1, %p1816_p0 }
 0x342   : > { %p1819_p3 = pnand %p1818_p2, %p1814_p13 }
 0x344   : > { %1310 = vrot.lane.b32.xlu1 %v942_v42, %s1867_s30  ;;  %1364 = vrot.lane.b32.xlu2 %v942_v42, %s1865_s26 }
 0x345   : > { %1366 = vrot.lane.b32.xlu0 %v943_v45, %s1865_s26 }
 0x34c   : > { %1421 = vperm.xlu1 %1737, %v1418_v46   ;;  %1312 = vrot.lane.b32.xlu2 %v943_v45, %s1867_s30 }
 0x34d   : > { %177 = vperm.xlu0 %1736, %v174_v47  }
 0x37e   : > { %v954_v48 = vpop.permute.xlu2 %953 }
 0x386   : > { %v1051_v49 = vpop.permute.xlu2 %1050 }
 0x38e   : > { %v1103_v63 = vpop.permute.xlu2 %1102 }
 0x396   : > { %v1049_v51 = vpop.permute.xlu1 %1048  ;;  %v1259_v14 = vpop.permute.xlu2 %1258 }
 0x397   : > { %v956_v56 = vpop.permute.xlu0 %955  ;;  %v1052_v61 = vsel %vm476_vm1, %v1049_v51, %v1051_v49  ;;  %v1053_v62 = vsel %vm476_vm1, %v1051_v49, %v1049_v51  ;;  %v1318_v51 = vld [vmem:[%s2344_s1 + $0xc8] sm:$0xff] }
 0x398   : > { %v957_v0 = vsel %vm378_vm2, %v954_v48, %v956_v56  ;;  %v958_v1 = vsel %vm378_vm2, %v956_v56, %v954_v48  ;;  %v1054_v4 = vmul.f32 %v1053_v62, %v479_v57  ;;  %v1055_v5 = vmul.f32 %v1052_v61, %v480_v58 }
 0x399   : > { %v959_v2 = vmul.f32 %v958_v1, %v381_v54  ;;  %v960_v3 = vmul.f32 %v957_v0, %v382_v55 }
 0x39b   : > { %980 = vmatpush.msra.mxu2 %v959_v2  ;;  %1000 = vmatpush.msra.mxu3 %v960_v3 }
 0x39c   : > { %1659 = vmatmul.msk.f32.vlgmr.msra.gmra.mxu2 %vm180_vm0, %v961_v8  ;;  %1660 = vmatmul.msk.f32.vlgmr.msra.gmra.mxu3 %vm180_vm0, %v961_v8 }
 0x39d   : > { %1075 = vmatpush.msrb.mxu2 %v1054_v4  ;;  %1095 = vmatpush.msrb.mxu3 %v1055_v5 }
 0x39e   : > { %v947_v54 = vpop.permute.xlu1 %946 }
 0x39f   : > { %1175 = vmatpush.msra.mxu2 %v942_v42  ;;  %1195 = vmatpush.msra.mxu3 %v943_v45  ;;  %v945_v55 = vpop.permute.xlu0 %944 }
 0x3a0   : > { %v948_v57 = vsel %vm366_vm3, %v945_v55, %v947_v54  ;;  %v949_v58 = vsel %vm366_vm3, %v947_v54, %v945_v55 }
 0x3a1   : > { %v950_v9 = vmul.f32 %v949_v58, %v369_v6  ;;  %v951_v12 = vmul.f32 %v948_v57, %v370_v7 }
 0x3a3   : > { %1023 = vmatpush.msrb.mxu0 %v950_v9  ;;  %1043 = vmatpush.msrb.mxu1 %v951_v12 }
 0x3a4   : > { %1661 = vmatmul.msk.f32.vlgmr.msrb.gmra.mxu0 %vm180_vm0, %v952_v13  ;;  %1662 = vmatmul.msk.f32.vlgmr.msrb.gmra.mxu1 %vm180_vm0, %v952_v13 }
 0x3a5   : > { %1663 = vmatmul.msk.f32.vlgmr.msrb.gmra.mxu2 %vm180_vm0, %v1056_v15  ;;  %1664 = vmatmul.msk.f32.vlgmr.msrb.gmra.mxu3 %vm180_vm0, %v1056_v15 }
 0x3a6   : > { %v1257_v6 = vpop.permute.xlu1 %1256 }
 0x3a7   : > { %v1105_v7 = vpop.permute.xlu0 %1104  ;;  %v1260_v16 = vsel %vm693_vm6, %v1257_v6, %v1259_v14  ;;  %v1261_v17 = vsel %vm693_vm6, %v1259_v14, %v1257_v6 }
 0x3a8   : > { %v1106_v19 = vsel %vm533_vm4, %v1103_v63, %v1105_v7  ;;  %v1107_v21 = vsel %vm533_vm4, %v1105_v7, %v1103_v63  ;;  %v1262_v28 = vmul.f32 %v1260_v16, %v696_v23  ;;  %v1263_v31 = vmul.f32 %v1261_v17, %v697_v27  ;;  %v1365_v23 = vpop.permute.xlu2 %1364 }
 0x3a9   : > { %v1108_v22 = vmul.f32 %v1107_v21, %v536_v10  ;;  %v1109_v32 = vmul.f32 %v1106_v19, %v537_v11 }
 0x3aa   : > { %1283 = vmatpush.msrb.mxu2 %v1262_v28  ;;  %1303 = vmatpush.msrb.mxu3 %v1263_v31 }
 0x3ab   : > { %1129 = vmatpush.msra.mxu0 %v1108_v22  ;;  %1149 = vmatpush.msra.mxu1 %v1109_v32  ;;  %v1440_v32 = vld [vmem:[%s2344_s1 + $0xe0] sm:$0xff] }
 0x3ac   : > { %1665 = vmatmul.msk.f32.vlgmr.msra.gmra.mxu0 %vm180_vm0, %v1110_v33  ;;  %1666 = vmatmul.msk.f32.vlgmr.msra.gmra.mxu1 %vm180_vm0, %v1110_v33 }
 0x3ad   : > { %1667 = vmatmul.msk.f32.vlgmr.msra.gmra.mxu2 %vm180_vm0, %v1156_v34  ;;  %1668 = vmatmul.msk.f32.vlgmr.msra.gmra.mxu3 %vm180_vm0, %v1156_v34 }
 0x3ae   : > { %v1205_v10 = vpop.permute.xlu1 %1204 }
 0x3af   : > { %v1203_v11 = vpop.permute.xlu0 %1202 }
 0x3b0   : > { %v1206_v27 = vsel %vm636_vm7, %v1203_v11, %v1205_v10  ;;  %v1207_v35 = vsel %vm636_vm7, %v1205_v10, %v1203_v11 }
 0x3b1   : > { %v1208_v36 = vmul.f32 %v1206_v27, %v639_v43  ;;  %v1209_v24 = vmul.f32 %v1207_v35, %v640_v44  ;;  %v1313_v43 = vpop.permute.xlu2 %1312 }
 0x3b3   : > { %1229 = vmatpush.msrb.mxu0 %v1208_v36  ;;  %1249 = vmatpush.msrb.mxu1 %v1209_v24  ;;  %v1528_v24 = vld [vmem:[%s2344_s1 + $0xf0] sm:$0xff] }
 0x3b4   : > { %1669 = vmatmul.msk.f32.vlgmr.msrb.gmra.mxu0 %vm180_vm0, %v1210_v37  ;;  %1670 = vmatmul.msk.f32.vlgmr.msrb.gmra.mxu1 %vm180_vm0, %v1210_v37 }
 0x3b5   : > { %1671 = vmatmul.msk.f32.vlgmr.msrb.gmra.mxu2 %vm180_vm0, %v1264_v38  ;;  %1672 = vmatmul.msk.f32.vlgmr.msrb.gmra.mxu3 %vm180_vm0, %v1264_v38 }
 0x3b6   : > { %v1311_v44 = vpop.permute.xlu1 %1310  ;;  %1531 = vperm.xlu2 %1738, %v1528_v24  }
 0x3b7   : > { %v1367_v39 = vpop.permute.xlu0 %1366  ;;  %v1314_v40 = vsel %vm750_vm8, %v1311_v44, %v1313_v43  ;;  %v1315_v41 = vsel %vm750_vm8, %v1313_v43, %v1311_v44 }
 0x3b8   : > { %v1368_v42 = vsel %vm807_vm5, %v1365_v23, %v1367_v39  ;;  %v1369_v45 = vsel %vm807_vm5, %v1367_v39, %v1365_v23  ;;  %v1316_v46 = vmul.f32 %v1314_v40, %v753_v59  ;;  %v1317_v47 = vmul.f32 %v1315_v41, %v754_v60 }
 0x3b9   : > { %v1370_v48 = vmul.f32 %v1368_v42, %v810_v29  ;;  %v1371_v49 = vmul.f32 %v1369_v45, %v811_v30 }
 0x3ba   : > { %1337 = vmatpush.msra.mxu0 %v1316_v46  ;;  %1357 = vmatpush.msra.mxu1 %v1317_v47 }
 0x3bb   : > { %1391 = vmatpush.msra.mxu2 %v1370_v48  ;;  %1411 = vmatpush.msra.mxu3 %v1371_v49 }
 0x3bc   : > { %1673 = vmatmul.msk.f32.vlgmr.msra.gmra.mxu0 %vm180_vm0, %v1318_v51  ;;  %1674 = vmatmul.msk.f32.vlgmr.msra.gmra.mxu1 %vm180_vm0, %v1318_v51 }
 0x3bd   : > { %1675 = vmatmul.msk.f32.vlgmr.msra.gmra.mxu2 %vm180_vm0, %v1372_v50  ;;  %1676 = vmatmul.msk.f32.vlgmr.msra.gmra.mxu3 %vm180_vm0, %v1372_v50 }
 0x3be   : > { %v1422_v39 = vpop.permute.xlu1 %1421 }
 0x3bf   : > { %v178_v52 = vpop.permute.xlu0 %177 }
 0x3c0   : > { %v202_v53 = vadd.f32 %v1968_v25, %v178_v52  ;;  %v222_v29 = vadd.f32 %v1970_v26, %v178_v52 }
 0x3c2   : > { %v224_v30 = vsub.f32 0.0, %v202_v53  ;;  %v225_v59 = vsub.f32 0.0, %v222_v29 }
 0x3c4   : > { %v226_v60 = vmul.f32 1.442695, %v224_v30  ;;  %v228_v56 = vmul.f32 1.442695, %v225_v59 }
 0x3c6   : > { %1771 = vpow2.f32 %v226_v60  ;;  %v1441_v60 = vld [vmem:[%s2344_s1 + $0xe8] sm:$0xff] }
 0x3c7   : > { %1773 = vpow2.f32 %v228_v56 }
 0x3cc   : > { %v1772_v61 = vpop.eup %1771 }
 0x3cd   : > { %v1774_v62 = vpop.eup %1773  ;;  %v230_v63 = vadd.f32 1.0, %v1772_v61 }
 0x3ce   : > { %v231_v0 = vadd.f32 1.0, %v1774_v62 }
 0x3cf   : > { %1775 = vrcp.f32 %v230_v63 }
 0x3d0   : > { %1777 = vrcp.f32 %v231_v0 }
 0x3d5   : > { %v1776_v1 = vpop.eup %1775 }
 0x3d6   : > { %v1778_v2 = vpop.eup %1777  ;;  %v234_v3 = vmul.f32 %v1776_v1, %v202_v53 }
 0x3d7   : > { %v235_v4 = vmul.f32 %v1778_v2, %v222_v29 }
 0x3d8   : > { %1503 = vmatpush.msrb.mxu2 %v234_v3 }
 0x3d9   : > { %1523 = vmatpush.msrb.mxu3 %v235_v4  ;;  %1679 = vmatmul.msk.f32.vlgmr.msrb.gmra.mxu2 %vm180_vm0, %v1440_v32 }
 0x3da   : > { %1680 = vmatmul.msk.f32.vlgmr.msrb.gmra.mxu3 %vm180_vm0, %v1440_v32 }
 0x410   : > { %v1532_v0 = vpop.permute.xlu2 %1531 }
 0x41f   : > { %v982_v25 = vpop.f32.mrf.mxu2  ;;  %v1002_v26 = vpop.f32.mrf.mxu3 }
 0x421   : > { %v1025_v5 = vpop.f32.mrf.mxu0  ;;  %v1045_v8 = vpop.f32.mrf.mxu1 }
 0x422   : > { %v1026_v9 = vadd.f32 %v1025_v5, %v982_v25  ;;  %v1046_v12 = vadd.f32 %v1045_v8, %v1002_v26 }
 0x428   : > { %v1077_v54 = vpop.f32.mrf.mxu2  ;;  %v1097_v55 = vpop.f32.mrf.mxu3 }
 0x429   : > { %v1131_v57 = vpop.f32.mrf.mxu0  ;;  %v1151_v58 = vpop.f32.mrf.mxu1  ;;  %v1100_v13 = vadd.f32 %v1077_v54, %v1026_v9  ;;  %v1101_v14 = vadd.f32 %v1097_v55, %v1046_v12 }
 0x42b   : > { %v1154_v17 = vadd.f32 %v1131_v57, %v1100_v13  ;;  %v1155_v19 = vadd.f32 %v1151_v58, %v1101_v14 }
 0x430   : > { %v1177_v15 = vpop.f32.mrf.mxu2  ;;  %v1197_v6 = vpop.f32.mrf.mxu3 }
 0x431   : > { %v1231_v7 = vpop.f32.mrf.mxu0  ;;  %v1251_v16 = vpop.f32.mrf.mxu1  ;;  %v1200_v21 = vadd.f32 %v1177_v15, %v1154_v17  ;;  %v1201_v28 = vadd.f32 %v1197_v6, %v1155_v19 }
 0x433   : > { %v1254_v33 = vadd.f32 %v1231_v7, %v1200_v21  ;;  %v1255_v34 = vadd.f32 %v1251_v16, %v1201_v28 }
 0x438   : > { %v1285_v31 = vpop.f32.mrf.mxu2  ;;  %v1305_v22 = vpop.f32.mrf.mxu3 }
 0x439   : > { %v1308_v23 = vadd.f32 %v1285_v31, %v1254_v33  ;;  %v1309_v10 = vadd.f32 %v1305_v22, %v1255_v34  ;;  %v1339_v11 = vpop.f32.mrf.mxu0  ;;  %v1359_v27 = vpop.f32.mrf.mxu1 }
 0x43b   : > { %v1362_v35 = vadd.f32 %v1339_v11, %v1308_v23  ;;  %v1363_v36 = vadd.f32 %v1359_v27, %v1309_v10 }
 0x440   : > { %v1393_v37 = vpop.f32.mrf.mxu2  ;;  %v1413_v38 = vpop.f32.mrf.mxu3 }
 0x441   : > { %v1416_v43 = vadd.f32 %v1393_v37, %v1362_v35  ;;  %v1417_v44 = vadd.f32 %v1413_v38, %v1363_v36 }
 0x443   : > { %v1424_v40 = vadd.f32 %v1422_v39, %v1416_v43  ;;  %v1425_v41 = vadd.f32 %v1422_v39, %v1417_v44 }
 0x445   : > { %v1426_v42 = vsub.f32 0.0, %v1424_v40  ;;  %v1427_v45 = vsub.f32 0.0, %v1425_v41 }
 0x447   : > { %v1428_v46 = vmul.f32 1.442695, %v1426_v42  ;;  %v1430_v47 = vmul.f32 1.442695, %v1427_v45 }
 0x449   : > { %1779 = vpow2.f32 %v1428_v46 }
 0x44a   : > { %1781 = vpow2.f32 %v1430_v47 }
 0x44f   : > { %v1780_v48 = vpop.eup %1779 }
 0x450   : > { %v1782_v49 = vpop.eup %1781  ;;  %v1432_v51 = vadd.f32 1.0, %v1780_v48 }
 0x451   : > { %v1433_v50 = vadd.f32 1.0, %v1782_v49 }
 0x452   : > { %1783 = vrcp.f32 %v1432_v51 }
 0x453   : > { %1785 = vrcp.f32 %v1433_v50 }
 0x458   : > { %v1784_v52 = vpop.eup %1783 }
 0x459   : > { %v1786_v53 = vpop.eup %1785  ;;  %v1436_v29 = vmul.f32 %v1784_v52, %v1424_v40 }
 0x45a   : > { %v1437_v30 = vmul.f32 %v1786_v53, %v1425_v41 }
 0x45b   : > { %v1438_v59 = vadd.f32 %v1436_v29, %v2151_v18 }
 0x45c   : > { %v1439_v56 = vadd.f32 %v1437_v30, %v2157_v20  ;;  %v1505_v61 = vpop.f32.mrf.mxu2 }
 0x45d   : > { %1460 = vmatpush.msrb.mxu0 %v1438_v59  ;;  %v1525_v62 = vpop.f32.mrf.mxu3 }
 0x45e   : > { %1480 = vmatpush.msrb.mxu1 %v1439_v56  ;;  %1677 = vmatmul.msk.f32.vlgmr.msrb.gmra.mxu0 %vm180_vm0, %v1441_v60 }
 0x45f   : > { %1678 = vmatmul.msk.f32.vlgmr.msrb.gmra.mxu1 %vm180_vm0, %v1441_v60 }
 0x4db   : > { %v1462_v63 = vpop.f32.mrf.mxu0 }
 0x4dc   : > { %v1482_v1 = vpop.f32.mrf.mxu1  ;;  %v1506_v2 = vadd.f32 %v1505_v61, %v1462_v63 }
 0x4dd   : > { %v1526_v18 = vadd.f32 %v1525_v62, %v1482_v1 }
 0x4de   : > { %v1534_v3 = vadd.f32 %v1532_v0, %v1506_v2 }
 0x4df   : > { %v1535_v4 = vadd.f32 %v1532_v0, %v1526_v18 }
 0x4e0   : > { %v1536_v25 = vsub.f32 0.0, %v1534_v3 }
 0x4e1   : > { %v1537_v26 = vsub.f32 0.0, %v1535_v4 }
 0x4e2   : > { %v1538_v20 = vmul.f32 1.442695, %v1536_v25 }
 0x4e3   : > { %v1540_v5 = vmul.f32 1.442695, %v1537_v26 }
 0x4e4   : > { %1787 = vpow2.f32 %v1538_v20 }
 0x4e5   : > { %1789 = vpow2.f32 %v1540_v5 }
 0x4ea   : > { %v1788_v8 = vpop.eup %1787 }
 0x4eb   : > { %v1790_v54 = vpop.eup %1789  ;;  %v1542_v55 = vadd.f32 1.0, %v1788_v8 }
 0x4ec   : > { %v1543_v57 = vadd.f32 1.0, %v1790_v54 }
 0x4ed   : > { %1791 = vrcp.f32 %v1542_v55 }
 0x4ee   : > { %1793 = vrcp.f32 %v1543_v57 }
 0x4f3   : > { %v1792_v58 = vpop.eup %1791 }
 0x4f4   : > { %v1794_v9 = vpop.eup %1793  ;;  %v1546_v12 = vmul.f32 %v1792_v58, %v1534_v3 }
 0x4f5   : > { %v1547_v13 = vmul.f32 %v1794_v9, %v1535_v4 }
 0x4f6   : > { %1548 = vst [vmem:[%s163_s8] sm:$0xff] %v1546_v12 }
 0x4f7   : > { %1549 = vst [vmem:[%s163_s8 + $0x8] sm:$0xff] %v1547_v13 }
 0x4f8   : > { %1822 = shalt.err (!%p1819_p3)
}
 0x4f9   : > { %1688 = dma.vmem_to_hbm [thread:$0]  (%p1926_p5), %s1565_s9, 256, %s1567_s19, %s1551_s17  }
 0x4fa PF: > { %p1694_p4 = scmp.ge.s32.totalorder %s1857_s15, 2  ;;  %s1578_s30 = sand.u32 1, %s1845_s12  }
 0x4fb   : > { %s1579_s11 = scalar_lea.sflag [#allocation3], %s1578_s30 }
 0x4fc   : > { %p1691_p7 = pnand %p1694_p4, %p1930_p6 }
 0x4fe   : > { %p1692_p8 = pneg %p1691_p7 }
 0x500   : > { %1840 = dma.done.wait (%p1692_p8), %s1579_s11, 256  }
 0x501   : > { %1842 = vsyncadd (%p1692_p8), %s1579_s11, 4294967040  ;;  %p13_p9 = scmp.ge.s32.totalorder %s1913_s18, 4   ;;  %s2349_s12 = smov %s1849_s13 }
 0x502   : > { %s2350_s13 = smov %s1853_s14  ;;  %s2351_s14 = smov %s1924_s21 }
 0x503   : > { %s2352_s15 = smov %s1913_s18  ;;  %15 = sbr.rel (!%p13_p9) target bundleno = 3 (0x3), region = 67 }
 0x508   :  { %1585 = vsyncpa [#allocation3], 1 }
 0x509   :  { %1587 = vsyncpa [#allocation3 + $0x1], 1 }

</bundles_post_ra>
